<compile_context>
chip_gen: v5e
topology: v5e:2x2
jax: 0.10.0
libtpu: 0.0.40
codegen_flags: <defaults>
</compile_context>

<pallas_src>
import jax
import jax.numpy as jnp
from jax.experimental import pallas as pl
from jax.experimental.pallas import tpu as pltpu


# ----------------------------- Pallas kernel -------------------------------

def _make_decoder_kernel(num_layers, H, T_actual, needs_mask):
    """Per (batch-block, time-block) kernel.  Grid axis 1 == time (sequential)."""

    def kernel(*refs):
        idx = 0
        emb_ref = refs[idx]; idx += 1        # (Tb, Bb, E)  raw embedding block
        syn_ref = refs[idx]; idx += 1        # (Bb, 3H)     syn_z @ W_i3_syn + b_i3
        sem_ref = refs[idx]; idx += 1        # (Bb, V)      sem_z @ W_out_sem + b_out
        wi0e_ref = refs[idx]; idx += 1       # (E, 3H)      layer-0 emb-part input weights
        layer_refs = [refs[idx:idx + 2]]; idx += 2           # layer 0: (W_h3, b_hn)
        for _ in range(1, num_layers):                       # layers>0: (W_i3, b_i3, W_h3, b_hn)
            layer_refs.append(refs[idx:idx + 4]); idx += 4
        wout_h_ref = refs[idx]; idx += 1     # (H, V)
        wout_e_ref = refs[idx]; idx += 1     # (E, V)
        scores_ref = refs[idx]; idx += 1     # (Tb, Bb, V)  out
        logits_ref = refs[idx]; idx += 1     # (Tb, Bb, V)  out
        hid_out_ref = refs[idx]; idx += 1    # (L, Bb, H)   out (last block only)
        out_out_ref = refs[idx]; idx += 1    # (Bb, H)      out (last block only)
        h_scr = refs[idx]; idx += 1          # VMEM (L, Bb, H) recurrent state
        x_scr = refs[idx]; idx += 1          # VMEM (Tb, Bb, H) per-step last-layer outputs

        Tb, Bb, E = emb_ref.shape
        V = wout_h_ref.shape[1]
        tb = pl.program_id(1)

        # hidden=None in the PyTorch forward -> GRUCell starts from zeros.
        @pl.when(tb == 0)
        def _init():
            h_scr[...] = jnp.zeros_like(h_scr)

        # ---- hoisted, time-invariant loads (no per-step re-loads/broadcasts) --
        emb_flat = emb_ref[...].reshape(Tb * Bb, E)           # (Tb*Bb, E)
        syn_c = syn_ref[...]                                  # (Bb, 3H)
        sem_c = sem_ref[...]                                  # (Bb, V)
        wout_h = wout_h_ref[...]                              # (H, V)
        wout_e = wout_e_ref[...]                              # (E, V)
        lw = []
        for l in range(num_layers):
            if l == 0:
                lw.append((None, None,
                           layer_refs[0][0][...], layer_refs[0][1][...]))
            else:
                w_i3, b_i3, w_h3, b_hn = (r[...] for r in layer_refs[l])
                lw.append((w_i3, b_i3, w_h3, b_hn))

        # Layer-0 input-gate pre-activations for the WHOLE block: one wide
        # (Tb*Bb, E) @ (E, 3H) MXU push (replaces the old per-step HBM stream).
        gi0_flat = jnp.dot(emb_flat, wi0e_ref[...],
                           preferred_element_type=jnp.float32)    # (Tb*Bb, 3H)

        def gru_step(s, gi):
            x = None
            for l in range(num_layers):
                w_i3, b_i3, w_h3, b_hn = lw[l]
                if l > 0:
                    gi = (jnp.dot(x, w_i3, preferred_element_type=jnp.float32)
                          + b_i3)                                   # (Bb, 3H)
                h = h_scr[l]                                        # (Bb, H)
                gh = jnp.dot(h, w_h3, preferred_element_type=jnp.float32)
                r = jax.nn.sigmoid(gi[:, :H] + gh[:, :H])
                z = jax.nn.sigmoid(gi[:, H:2 * H] + gh[:, H:2 * H])
                n = jnp.tanh(gi[:, 2 * H:] + r * (gh[:, 2 * H:] + b_hn))
                h_new = (1.0 - z) * n + z * h
                h_scr[l] = h_new
                x = h_new
                # TODO(synk): inter-layer dropout omitted (module default dropout=0.0 -> identity).
            x_scr[s] = x

        for s in range(Tb):                                   # static unroll
            gi_s = gi0_flat[s * Bb:(s + 1) * Bb] + syn_c      # (Bb, 3H)
            if needs_mask:
                # Skip padded-tail steps entirely (no matmuls, no state update).
                pl.when((tb * Tb + s) < T_actual)(
                    lambda s=s, gi_s=gi_s: gru_step(s, gi_s))
            else:
                gru_step(s, gi_s)

        # ---- batched block output projection + log_softmax -------------------
        # One (Tb*Bb, H)@(H, V) + one (Tb*Bb, E)@(E, V) matmul, one lane-dense
        # (Tb, Bb, V) slab store each for scores and logits.
        x_blk = x_scr[...].reshape(Tb * Bb, H)
        logits_flat = (jnp.dot(x_blk, wout_h, preferred_element_type=jnp.float32)
                       + jnp.dot(emb_flat, wout_e,
                                 preferred_element_type=jnp.float32))
        logits = logits_flat.reshape(Tb, Bb, V) + sem_c
        m = jnp.max(logits, axis=-1, keepdims=True)
        lse = m + jnp.log(jnp.sum(jnp.exp(logits - m), axis=-1, keepdims=True))
        scores_ref[...] = logits - lse
        logits_ref[...] = logits

        # Final-state outputs only need to materialize on the last time block.
        @pl.when(tb == pl.num_programs(1) - 1)
        def _finalize():
            hid_out_ref[...] = h_scr[...]
            out_out_ref[...] = h_scr[num_layers - 1]

    return kernel


# ------------------------------- wrapper ------------------------------------

def vae_decoder_forward(input_seq, prev_output, sem_z, syn_z, params,
                        time_block=8, batch_block=None):
    """Pallas implementation of VAEDecoder.forward (input_feeding=False,
    use_last_output=True, dropout=0.0).

    Returns (scores, hidden, output, logits) matching the PyTorch module:
      scores : (T, B, V)   log-softmax of logits
      hidden : (L, B, H)   final stacked GRU hidden state
      output : (B, H)      last-layer output at the final step
      logits : (T, B, V)
    """
    del prev_output  # only used when input_feeding=True
    emb_table = params["embedding"]
    layers = params["layers"]
    L = len(layers)
    B, T = input_seq.shape
    E = emb_table.shape[1]
    H = layers[0]["whr"].shape[0]
    Lz = sem_z.shape[1]
    V = params["w_out"].shape[1]
    G3 = 3 * H

    # Batch blocking: a "parallel" grid axis lets v7x spread independent batch
    # rows across its 2 TensorCores (each core gets its own recurrent scratch).
    Bb = B if batch_block is None else int(batch_block)
    Bb = max(1, min(Bb, B))
    if B % Bb != 0:
        Bb = B
    n_bb = B // Bb

    # Time blocking: prefer Tb | T (eliminates all padded-tail work), capped by
    # a conservative VMEM budget so the per-block slabs fit even on v7x (64 MiB).
    Tb = max(1, min(time_block, T))
    per_step_bytes = 4 * Bb * (E + 2 * V)          # emb stream + scores/logits out
    Tb = max(1, min(Tb, (24 * 1024 * 1024) // max(1, 4 * per_step_bytes)))
    Tb_div = None
    for cand in range(Tb, max(1, Tb // 2) - 1, -1):
        if T % cand == 0:
            Tb_div = cand
            break
    if Tb_div is not None:
        Tb, T_pad = Tb_div, T
    else:
        T_pad = pl.cdiv(T, Tb) * Tb
    n_tb = T_pad // Tb
    needs_mask = (T_pad != T)

    # ---- plain-JAX glue: embedding lookup + time-invariant hoists ----------
    embs = jnp.take(emb_table, input_seq, axis=0)                      # (B, T, E)
    embs_tm = jnp.transpose(embs, (1, 0, 2)).astype(jnp.float32)       # (T, B, E)
    if needs_mask:
        embs_tm = jnp.pad(embs_tm, ((0, T_pad - T), (0, 0), (0, 0)))

    # Fused layer-0 input weights, split into emb rows / syn rows.
    l0 = layers[0]
    Wi0 = jnp.concatenate([l0["wir"], l0["wiz"], l0["win"]], axis=1)   # (E+H, 3H)
    bi0 = jnp.concatenate([l0["b_r"], l0["b_z"], l0["b_in"]], axis=1)  # (1, 3H)
    Wh0 = jnp.concatenate([l0["whr"], l0["whz"], l0["whn"]], axis=1)   # (H, 3H)
    Wi0_emb, Wi0_syn = Wi0[:E], Wi0[E:]
    syn_gate_const = syn_z @ Wi0_syn + bi0                             # (B, 3H)

    layer_args = [Wh0, l0["b_hn"]]
    for lp in layers[1:]:
        Wi = jnp.concatenate([lp["wir"], lp["wiz"], lp["win"]], axis=1)   # (H, 3H)
        bi = jnp.concatenate([lp["b_r"], lp["b_z"], lp["b_in"]], axis=1)  # (1, 3H)
        Wh = jnp.concatenate([lp["whr"], lp["whz"], lp["whn"]], axis=1)   # (H, 3H)
        layer_args += [Wi, bi, Wh, lp["b_hn"]]

    # Output projection split: pred @ W_out = out@W_h + sem_z@W_sem + emb@W_emb.
    Wout = params["w_out"]
    Wout_h, Wout_sem, Wout_emb = Wout[:H], Wout[H:H + Lz], Wout[H + Lz:]
    sem_out_const = sem_z @ Wout_sem + params["b_out"]                 # (B, V)

    weights = [Wi0_emb] + layer_args + [Wout_h, Wout_emb]
    inputs = [embs_tm, syn_gate_const, sem_out_const] + weights

    in_specs = [
        pl.BlockSpec((Tb, Bb, E), lambda bb, tb: (tb, bb, 0)),   # emb stream
        pl.BlockSpec((Bb, G3), lambda bb, tb: (bb, 0)),          # syn gate const
        pl.BlockSpec((Bb, V), lambda bb, tb: (bb, 0)),           # sem out const
    ]
    for w in weights:                                            # resident 2-D weights
        in_specs.append(pl.BlockSpec(w.shape, lambda bb, tb: (0, 0)))

    out_shapes = (
        jax.ShapeDtypeStruct((T_pad, B, V), jnp.float32),        # scores
        jax.ShapeDtypeStruct((T_pad, B, V), jnp.float32),        # logits
        jax.ShapeDtypeStruct((L, B, H), jnp.float32),            # hidden
        jax.ShapeDtypeStruct((B, H), jnp.float32),               # output
    )
    out_specs = (
        pl.BlockSpec((Tb, Bb, V), lambda bb, tb: (tb, bb, 0)),
        pl.BlockSpec((Tb, Bb, V), lambda bb, tb: (tb, bb, 0)),
        pl.BlockSpec((L, Bb, H), lambda bb, tb: (0, bb, 0)),
        pl.BlockSpec((Bb, H), lambda bb, tb: (bb, 0)),
    )

    grid_spec = pltpu.PrefetchScalarGridSpec(
        num_scalar_prefetch=0,
        grid=(n_bb, n_tb),
        in_specs=in_specs,
        out_specs=out_specs,
        scratch_shapes=[pltpu.VMEM((L, Bb, H), jnp.float32),     # recurrent state
                        pltpu.VMEM((Tb, Bb, H), jnp.float32)],   # per-step outputs
    )

    # Explicit VMEM limit: keep the pipelined working set well under v7x's
    # 64 MiB physical VMEM (v5e/v6e have 128 MiB, so this is safe everywhere).
    vmem_est = 4 * (2 * Tb * Bb * E
                    + 2 * 2 * Tb * Bb * V
                    + Bb * (G3 + V)
                    + sum(int(w.size) for w in weights)
                    + (L + Tb) * Bb * H
                    + 4 * Tb * Bb * max(V, G3))
    vmem_limit = int(min(60 * 2**20, max(32 * 2**20, 2 * vmem_est)))

    scores, logits, hidden, output = pl.pallas_call(
        _make_decoder_kernel(L, H, T, needs_mask),
        out_shape=out_shapes,
        grid_spec=grid_spec,
        compiler_params=pltpu.CompilerParams(
            dimension_semantics=("parallel", "arbitrary"),
            vmem_limit_bytes=vmem_limit),
    )(*inputs)

    if needs_mask:
        scores, logits = scores[:T], logits[:T]
    return scores, hidden, output, logits


# ------------------------ pure-JAX reference (check) -------------------------

def reference_forward(input_seq, sem_z, syn_z, params):
    emb_table = params["embedding"]
    num_layers = len(params["layers"])
    B, T = input_seq.shape
    H = params["layers"][0]["whr"].shape[0]
    embs = jnp.take(emb_table, input_seq, axis=0)            # (B, T, E)
    h = [jnp.zeros((B, H), jnp.float32) for _ in range(num_layers)]
    scores, logits_l = [], []
    output = None
    for t in range(T):
        emb = embs[:, t, :]
        x = jnp.concatenate([emb, syn_z], axis=-1)
        for l, lp in enumerate(params["layers"]):
            r = jax.nn.sigmoid(x @ lp["wir"] + h[l] @ lp["whr"] + lp["b_r"])
            z = jax.nn.sigmoid(x @ lp["wiz"] + h[l] @ lp["whz"] + lp["b_z"])
            n = jnp.tanh(x @ lp["win"] + lp["b_in"] + r * (h[l] @ lp["whn"] + lp["b_hn"]))
            h[l] = (1.0 - z) * n + z * h[l]
            x = h[l]
        output = x
        pred = jnp.concatenate([output, sem_z, emb], axis=-1)
        lg = pred @ params["w_out"] + params["b_out"]
        logits_l.append(lg)
        scores.append(jax.nn.log_softmax(lg, axis=-1))
    return (jnp.stack(scores), jnp.stack(h), output, jnp.stack(logits_l))


# --------------------------------- main --------------------------------------

if __name__ == "__main__":
    VOCAB, EMB, HID, LAT = 128, 32, 32, 16
    LAYERS = 2
    INPUT_SIZE = EMB + HID               # emb_size + hidden_size
    SOFT_LAST = EMB + HID + LAT          # use_last_output=True

    key = jax.random.PRNGKey(0)

    def nrm(k, shape, scale=0.1):
        return (scale * jax.random.normal(k, shape)).astype(jnp.float32)

    keys = iter(jax.random.split(key, 96))
    layers = []
    in_sz = INPUT_SIZE
    for _ in range(LAYERS):
        layers.append(dict(
            wir=nrm(next(keys), (in_sz, HID)), wiz=nrm(next(keys), (in_sz, HID)),
            win=nrm(next(keys), (in_sz, HID)),
            whr=nrm(next(keys), (HID, HID)), whz=nrm(next(keys), (HID, HID)),
            whn=nrm(next(keys), (HID, HID)),
            b_r=nrm(next(keys), (1, HID)), b_z=nrm(next(keys), (1, HID)),
            b_in=nrm(next(keys), (1, HID)), b_hn=nrm(next(keys), (1, HID)),
        ))
        in_sz = HID

    params = dict(
        embedding=nrm(next(keys), (VOCAB, EMB), scale=0.5),
        layers=layers,
        w_out=nrm(next(keys), (SOFT_LAST, VOCAB)),
        b_out=nrm(next(keys), (1, VOCAB)),
    )

    # Config 0: Tb | T (no padded-tail), single batch block, recurrence carried
    #           across 2 time blocks.
    # Config 1: padded-tail mask path (T=7 -> pad to 8) + batch-parallel grid
    #           axis (2 batch blocks of 8 rows; v7x 2-TC layout).
    configs = [
        dict(B=8, T=8, time_block=4, batch_block=None),
        dict(B=16, T=7, time_block=4, batch_block=8),
    ]
    for ci, cfg in enumerate(configs):
        B, T = cfg["B"], cfg["T"]
        input_seq = jax.random.randint(next(keys), (B, T), 0, VOCAB, dtype=jnp.int32)
        prev_output = jnp.zeros((B, HID), jnp.float32)       # initial_output(batch)
        sem_z = nrm(next(keys), (B, LAT), scale=1.0)
        syn_z = nrm(next(keys), (B, HID), scale=1.0)

        scores, hidden, output, logits = jax.block_until_ready(
            vae_decoder_forward(input_seq, prev_output, sem_z, syn_z, params,
                                time_block=cfg["time_block"],
                                batch_block=cfg["batch_block"]))

        ref_scores, ref_hidden, ref_output, ref_logits = reference_forward(
            input_seq, sem_z, syn_z, params)

        assert scores.shape == (T, B, VOCAB)
        assert logits.shape == (T, B, VOCAB)
        assert hidden.shape == (LAYERS, B, HID)
        assert output.shape == (B, HID)
        for got, want in ((scores, ref_scores), (hidden, ref_hidden),
                          (output, ref_output), (logits, ref_logits)):
            assert jnp.allclose(got, want, rtol=1e-4, atol=1e-4), \
                f"mismatch vs reference (config {ci})"

    print("KERNEL_OK")
</pallas_src>

<mosaic_0001>
module attributes {stable_mosaic.version = 11 : i64} {
  func.func @kernel(%arg0: i32, %arg1: i32, %arg2: memref<4x8x32xf32, #tpu.memory_space<vmem>>, %arg3: memref<8x96xf32, #tpu.memory_space<vmem>>, %arg4: memref<8x128xf32, #tpu.memory_space<vmem>>, %arg5: memref<32x96xf32, #tpu.memory_space<vmem>>, %arg6: memref<32x96xf32, #tpu.memory_space<vmem>>, %arg7: memref<1x32xf32, #tpu.memory_space<vmem>>, %arg8: memref<32x96xf32, #tpu.memory_space<vmem>>, %arg9: memref<1x96xf32, #tpu.memory_space<vmem>>, %arg10: memref<32x96xf32, #tpu.memory_space<vmem>>, %arg11: memref<1x32xf32, #tpu.memory_space<vmem>>, %arg12: memref<32x128xf32, #tpu.memory_space<vmem>>, %arg13: memref<32x128xf32, #tpu.memory_space<vmem>>, %arg14: memref<4x8x128xf32, #tpu.memory_space<vmem>>, %arg15: memref<4x8x128xf32, #tpu.memory_space<vmem>>, %arg16: memref<2x8x32xf32, #tpu.memory_space<vmem>>, %arg17: memref<8x32xf32, #tpu.memory_space<vmem>>, %arg18: memref<2x8x32xf32, #tpu.memory_space<vmem>>, %arg19: memref<4x8x32xf32, #tpu.memory_space<vmem>>) attributes {dimension_semantics = [#tpu.dimension_semantics<parallel>, #tpu.dimension_semantics<arbitrary>], iteration_bounds = array<i64: 1, 2>, scalar_prefetch = 0 : i64, scratch_operands = 2 : i64, tpu.core_type = #tpu.core_type<tc>, window_params = [{transform_indices = @transform_0, window_bounds = array<i64: 4, 8, 32>}, {transform_indices = @transform_1, window_bounds = array<i64: 8, 96>}, {transform_indices = @transform_2, window_bounds = array<i64: 8, 128>}, {pipeline_mode = #tpu.pipeline_mode<synchronous>, transform_indices = @transform_3, window_bounds = array<i64: 32, 96>}, {pipeline_mode = #tpu.pipeline_mode<synchronous>, transform_indices = @transform_4, window_bounds = array<i64: 32, 96>}, {pipeline_mode = #tpu.pipeline_mode<synchronous>, transform_indices = @transform_5, window_bounds = array<i64: 1, 32>}, {pipeline_mode = #tpu.pipeline_mode<synchronous>, transform_indices = @transform_6, window_bounds = array<i64: 32, 96>}, {pipeline_mode = #tpu.pipeline_mode<synchronous>, transform_indices = @transform_7, window_bounds = array<i64: 1, 96>}, {pipeline_mode = #tpu.pipeline_mode<synchronous>, transform_indices = @transform_8, window_bounds = array<i64: 32, 96>}, {pipeline_mode = #tpu.pipeline_mode<synchronous>, transform_indices = @transform_9, window_bounds = array<i64: 1, 32>}, {pipeline_mode = #tpu.pipeline_mode<synchronous>, transform_indices = @transform_10, window_bounds = array<i64: 32, 128>}, {pipeline_mode = #tpu.pipeline_mode<synchronous>, transform_indices = @transform_11, window_bounds = array<i64: 32, 128>}, {transform_indices = @transform_12, window_bounds = array<i64: 4, 8, 128>}, {transform_indices = @transform_13, window_bounds = array<i64: 4, 8, 128>}, {transform_indices = @transform_14, window_bounds = array<i64: 2, 8, 32>}, {transform_indices = @transform_15, window_bounds = array<i64: 8, 32>}]} {
    %c0_i32 = arith.constant 0 : i32
    %0 = arith.cmpi eq, %arg1, %c0_i32 : i32
    %1 = arith.extui %0 : i1 to i32
    %c0_i32_0 = arith.constant 0 : i32
    %2 = arith.cmpi ne, %1, %c0_i32_0 : i32
    scf.if %2 {
      %cst_132 = arith.constant 0.000000e+00 : f32
      %346 = vector.broadcast %cst_132 : f32 to vector<2x8x32xf32>
      %c0_133 = arith.constant 0 : index
      %c0_134 = arith.constant 0 : index
      %c0_135 = arith.constant 0 : index
      %347 = vector.load %arg18[%c0_133, %c0_134, %c0_135] : memref<2x8x32xf32, #tpu.memory_space<vmem>>, vector<2x8x32xf32>
      tpu.vector_store %arg18[%c0_133, %c0_134, %c0_135], %346 {strides = array<i32>} : memref<2x8x32xf32, #tpu.memory_space<vmem>>, vector<2x8x32xf32>,
    } else {
    }
    %c0 = arith.constant 0 : index
    %c0_1 = arith.constant 0 : index
    %c0_2 = arith.constant 0 : index
    %3 = vector.load %arg2[%c0, %c0_1, %c0_2] : memref<4x8x32xf32, #tpu.memory_space<vmem>>, vector<4x8x32xf32>
    %4 = vector.shape_cast %3 : vector<4x8x32xf32> to vector<32x32xf32>
    %c0_3 = arith.constant 0 : index
    %c0_4 = arith.constant 0 : index
    %5 = vector.load %arg3[%c0_3, %c0_4] : memref<8x96xf32, #tpu.memory_space<vmem>>, vector<8x96xf32>
    %c0_5 = arith.constant 0 : index
    %c0_6 = arith.constant 0 : index
    %6 = vector.load %arg4[%c0_5, %c0_6] : memref<8x128xf32, #tpu.memory_space<vmem>>, vector<8x128xf32>
    %c0_7 = arith.constant 0 : index
    %c0_8 = arith.constant 0 : index
    %7 = vector.load %arg12[%c0_7, %c0_8] : memref<32x128xf32, #tpu.memory_space<vmem>>, vector<32x128xf32>
    %c0_9 = arith.constant 0 : index
    %c0_10 = arith.constant 0 : index
    %8 = vector.load %arg13[%c0_9, %c0_10] : memref<32x128xf32, #tpu.memory_space<vmem>>, vector<32x128xf32>
    %c0_11 = arith.constant 0 : index
    %c0_12 = arith.constant 0 : index
    %9 = vector.load %arg6[%c0_11, %c0_12] : memref<32x96xf32, #tpu.memory_space<vmem>>, vector<32x96xf32>
    %c0_13 = arith.constant 0 : index
    %c0_14 = arith.constant 0 : index
    %10 = vector.load %arg7[%c0_13, %c0_14] : memref<1x32xf32, #tpu.memory_space<vmem>>, vector<1x32xf32>
    %c0_15 = arith.constant 0 : index
    %c0_16 = arith.constant 0 : index
    %11 = vector.load %arg8[%c0_15, %c0_16] : memref<32x96xf32, #tpu.memory_space<vmem>>, vector<32x96xf32>
    %c0_17 = arith.constant 0 : index
    %c0_18 = arith.constant 0 : index
    %12 = vector.load %arg9[%c0_17, %c0_18] : memref<1x96xf32, #tpu.memory_space<vmem>>, vector<1x96xf32>
    %c0_19 = arith.constant 0 : index
    %c0_20 = arith.constant 0 : index
    %13 = vector.load %arg10[%c0_19, %c0_20] : memref<32x96xf32, #tpu.memory_space<vmem>>, vector<32x96xf32>
    %c0_21 = arith.constant 0 : index
    %c0_22 = arith.constant 0 : index
    %14 = vector.load %arg11[%c0_21, %c0_22] : memref<1x32xf32, #tpu.memory_space<vmem>>, vector<1x32xf32>
    %c0_23 = arith.constant 0 : index
    %c0_24 = arith.constant 0 : index
    %15 = vector.load %arg5[%c0_23, %c0_24] : memref<32x96xf32, #tpu.memory_space<vmem>>, vector<32x96xf32>
    %cst = arith.constant dense<0.000000e+00> : vector<32x96xf32>
    %16 = tpu.matmul %4, %15, %cst {dimension_numbers = #tpu.dot_dimension_numbers<[1], [0], [0], [1], [0, 0, 1, 1], [], []>} : vector<32x32xf32>, vector<32x96xf32>, vector<32x96xf32> -> vector<32x96xf32>
    %17 = vector.extract_strided_slice %16 {offsets = [0, 0], sizes = [8, 96], strides = [1, 1]} : vector<32x96xf32> to vector<8x96xf32>
    %18 = arith.addf %17, %5 : vector<8x96xf32>
    %c0_25 = arith.constant 0 : index
    %c0_26 = arith.constant 0 : index
    %c0_27 = arith.constant 0 : index
    %19 = vector.load %arg18[%c0_25, %c0_26, %c0_27] : memref<2x8x32xf32, #tpu.memory_space<vmem>>, vector<1x8x32xf32>
    %20 = vector.shape_cast %19 : vector<1x8x32xf32> to vector<8x32xf32>
    %cst_28 = arith.constant dense<0.000000e+00> : vector<8x96xf32>
    %21 = tpu.matmul %20, %9, %cst_28 {dimension_numbers = #tpu.dot_dimension_numbers<[1], [0], [0], [1], [0, 0, 1, 1], [], []>} : vector<8x32xf32>, vector<32x96xf32>, vector<8x96xf32> -> vector<8x96xf32>
    %22 = vector.extract_strided_slice %18 {offsets = [0, 0], sizes = [8, 32], strides = [1, 1]} : vector<8x96xf32> to vector<8x32xf32>
    %23 = vector.extract_strided_slice %21 {offsets = [0, 0], sizes = [8, 32], strides = [1, 1]} : vector<8x96xf32> to vector<8x32xf32>
    %24 = arith.addf %22, %23 : vector<8x32xf32>
    %25 = arith.negf %24 : vector<8x32xf32>
    %26 = math.exp %25 : vector<8x32xf32>
    %cst_29 = arith.constant 1.000000e+00 : f32
    %27 = vector.broadcast %cst_29 : f32 to vector<8x32xf32>
    %28 = arith.addf %27, %26 : vector<8x32xf32>
    %29 = arith.divf %27, %28 : vector<8x32xf32>
    %30 = vector.extract_strided_slice %18 {offsets = [0, 32], sizes = [8, 32], strides = [1, 1]} : vector<8x96xf32> to vector<8x32xf32>
    %31 = vector.extract_strided_slice %21 {offsets = [0, 32], sizes = [8, 32], strides = [1, 1]} : vector<8x96xf32> to vector<8x32xf32>
    %32 = arith.addf %30, %31 : vector<8x32xf32>
    %33 = arith.negf %32 : vector<8x32xf32>
    %34 = math.exp %33 : vector<8x32xf32>
    %cst_30 = arith.constant 1.000000e+00 : f32
    %35 = vector.broadcast %cst_30 : f32 to vector<8x32xf32>
    %36 = arith.addf %35, %34 : vector<8x32xf32>
    %37 = arith.divf %35, %36 : vector<8x32xf32>
    %38 = vector.extract_strided_slice %18 {offsets = [0, 64], sizes = [8, 32], strides = [1, 1]} : vector<8x96xf32> to vector<8x32xf32>
    %39 = vector.extract_strided_slice %21 {offsets = [0, 64], sizes = [8, 32], strides = [1, 1]} : vector<8x96xf32> to vector<8x32xf32>
    %40 = vector.broadcast %10 : vector<1x32xf32> to vector<8x32xf32>
    %41 = arith.addf %39, %40 : vector<8x32xf32>
    %42 = arith.mulf %29, %41 : vector<8x32xf32>
    %43 = arith.addf %38, %42 : vector<8x32xf32>
    %44 = math.tanh %43 : vector<8x32xf32>
    %cst_31 = arith.constant 1.000000e+00 : f32
    %45 = vector.broadcast %cst_31 : f32 to vector<8x32xf32>
    %46 = arith.subf %45, %37 : vector<8x32xf32>
    %47 = arith.mulf %46, %44 : vector<8x32xf32>
    %48 = arith.mulf %37, %20 : vector<8x32xf32>
    %49 = arith.addf %47, %48 : vector<8x32xf32>
    %c0_32 = arith.constant 0 : index
    %c0_33 = arith.constant 0 : index
    %c0_34 = arith.constant 0 : index
    %50 = vector.load %arg18[%c0_32, %c0_33, %c0_34] : memref<2x8x32xf32, #tpu.memory_space<vmem>>, vector<1x8x32xf32>
    %51 = vector.shape_cast %50 : vector<1x8x32xf32> to vector<8x32xf32>
    %52 = vector.shape_cast %49 : vector<8x32xf32> to vector<1x8x32xf32>
    tpu.vector_store %arg18[%c0_32, %c0_33, %c0_34], %52 {strides = array<i32>} : memref<2x8x32xf32, #tpu.memory_space<vmem>>, vector<1x8x32xf32>,
    %cst_35 = arith.constant dense<0.000000e+00> : vector<8x96xf32>
    %53 = tpu.matmul %49, %11, %cst_35 {dimension_numbers = #tpu.dot_dimension_numbers<[1], [0], [0], [1], [0, 0, 1, 1], [], []>} : vector<8x32xf32>, vector<32x96xf32>, vector<8x96xf32> -> vector<8x96xf32>
    %54 = vector.broadcast %12 : vector<1x96xf32> to vector<8x96xf32>
    %55 = arith.addf %53, %54 : vector<8x96xf32>
    %c1 = arith.constant 1 : index
    %c0_36 = arith.constant 0 : index
    %c0_37 = arith.constant 0 : index
    %56 = vector.load %arg18[%c1, %c0_36, %c0_37] : memref<2x8x32xf32, #tpu.memory_space<vmem>>, vector<1x8x32xf32>
    %57 = vector.shape_cast %56 : vector<1x8x32xf32> to vector<8x32xf32>
    %cst_38 = arith.constant dense<0.000000e+00> : vector<8x96xf32>
    %58 = tpu.matmul %57, %13, %cst_38 {dimension_numbers = #tpu.dot_dimension_numbers<[1], [0], [0], [1], [0, 0, 1, 1], [], []>} : vector<8x32xf32>, vector<32x96xf32>, vector<8x96xf32> -> vector<8x96xf32>
    %59 = vector.extract_strided_slice %55 {offsets = [0, 0], sizes = [8, 32], strides = [1, 1]} : vector<8x96xf32> to vector<8x32xf32>
    %60 = vector.extract_strided_slice %58 {offsets = [0, 0], sizes = [8, 32], strides = [1, 1]} : vector<8x96xf32> to vector<8x32xf32>
    %61 = arith.addf %59, %60 : vector<8x32xf32>
    %62 = arith.negf %61 : vector<8x32xf32>
    %63 = math.exp %62 : vector<8x32xf32>
    %cst_39 = arith.constant 1.000000e+00 : f32
    %64 = vector.broadcast %cst_39 : f32 to vector<8x32xf32>
    %65 = arith.addf %64, %63 : vector<8x32xf32>
    %66 = arith.divf %64, %65 : vector<8x32xf32>
    %67 = vector.extract_strided_slice %55 {offsets = [0, 32], sizes = [8, 32], strides = [1, 1]} : vector<8x96xf32> to vector<8x32xf32>
    %68 = vector.extract_strided_slice %58 {offsets = [0, 32], sizes = [8, 32], strides = [1, 1]} : vector<8x96xf32> to vector<8x32xf32>
    %69 = arith.addf %67, %68 : vector<8x32xf32>
    %70 = arith.negf %69 : vector<8x32xf32>
    %71 = math.exp %70 : vector<8x32xf32>
    %cst_40 = arith.constant 1.000000e+00 : f32
    %72 = vector.broadcast %cst_40 : f32 to vector<8x32xf32>
    %73 = arith.addf %72, %71 : vector<8x32xf32>
    %74 = arith.divf %72, %73 : vector<8x32xf32>
    %75 = vector.extract_strided_slice %55 {offsets = [0, 64], sizes = [8, 32], strides = [1, 1]} : vector<8x96xf32> to vector<8x32xf32>
    %76 = vector.extract_strided_slice %58 {offsets = [0, 64], sizes = [8, 32], strides = [1, 1]} : vector<8x96xf32> to vector<8x32xf32>
    %77 = vector.broadcast %14 : vector<1x32xf32> to vector<8x32xf32>
    %78 = arith.addf %76, %77 : vector<8x32xf32>
    %79 = arith.mulf %66, %78 : vector<8x32xf32>
    %80 = arith.addf %75, %79 : vector<8x32xf32>
    %81 = math.tanh %80 : vector<8x32xf32>
    %cst_41 = arith.constant 1.000000e+00 : f32
    %82 = vector.broadcast %cst_41 : f32 to vector<8x32xf32>
    %83 = arith.subf %82, %74 : vector<8x32xf32>
    %84 = arith.mulf %83, %81 : vector<8x32xf32>
    %85 = arith.mulf %74, %57 : vector<8x32xf32>
    %86 = arith.addf %84, %85 : vector<8x32xf32>
    %c1_42 = arith.constant 1 : index
    %c0_43 = arith.constant 0 : index
    %c0_44 = arith.constant 0 : index
    %87 = vector.load %arg18[%c1_42, %c0_43, %c0_44] : memref<2x8x32xf32, #tpu.memory_space<vmem>>, vector<1x8x32xf32>
    %88 = vector.shape_cast %87 : vector<1x8x32xf32> to vector<8x32xf32>
    %89 = vector.shape_cast %86 : vector<8x32xf32> to vector<1x8x32xf32>
    tpu.vector_store %arg18[%c1_42, %c0_43, %c0_44], %89 {strides = array<i32>} : memref<2x8x32xf32, #tpu.memory_space<vmem>>, vector<1x8x32xf32>,
    %c0_45 = arith.constant 0 : index
    %c0_46 = arith.constant 0 : index
    %c0_47 = arith.constant 0 : index
    %90 = vector.load %arg19[%c0_45, %c0_46, %c0_47] : memref<4x8x32xf32, #tpu.memory_space<vmem>>, vector<1x8x32xf32>
    %91 = vector.shape_cast %90 : vector<1x8x32xf32> to vector<8x32xf32>
    %92 = vector.shape_cast %86 : vector<8x32xf32> to vector<1x8x32xf32>
    tpu.vector_store %arg19[%c0_45, %c0_46, %c0_47], %92 {strides = array<i32>} : memref<4x8x32xf32, #tpu.memory_space<vmem>>, vector<1x8x32xf32>,
    %93 = vector.extract_strided_slice %16 {offsets = [8, 0], sizes = [8, 96], strides = [1, 1]} : vector<32x96xf32> to vector<8x96xf32>
    %94 = arith.addf %93, %5 : vector<8x96xf32>
    %c0_48 = arith.constant 0 : index
    %c0_49 = arith.constant 0 : index
    %c0_50 = arith.constant 0 : index
    %95 = vector.load %arg18[%c0_48, %c0_49, %c0_50] : memref<2x8x32xf32, #tpu.memory_space<vmem>>, vector<1x8x32xf32>
    %96 = vector.shape_cast %95 : vector<1x8x32xf32> to vector<8x32xf32>
    %cst_51 = arith.constant dense<0.000000e+00> : vector<8x96xf32>
    %97 = tpu.matmul %96, %9, %cst_51 {dimension_numbers = #tpu.dot_dimension_numbers<[1], [0], [0], [1], [0, 0, 1, 1], [], []>} : vector<8x32xf32>, vector<32x96xf32>, vector<8x96xf32> -> vector<8x96xf32>
    %98 = vector.extract_strided_slice %94 {offsets = [0, 0], sizes = [8, 32], strides = [1, 1]} : vector<8x96xf32> to vector<8x32xf32>
    %99 = vector.extract_strided_slice %97 {offsets = [0, 0], sizes = [8, 32], strides = [1, 1]} : vector<8x96xf32> to vector<8x32xf32>
    %100 = arith.addf %98, %99 : vector<8x32xf32>
    %101 = arith.negf %100 : vector<8x32xf32>
    %102 = math.exp %101 : vector<8x32xf32>
    %cst_52 = arith.constant 1.000000e+00 : f32
    %103 = vector.broadcast %cst_52 : f32 to vector<8x32xf32>
    %104 = arith.addf %103, %102 : vector<8x32xf32>
    %105 = arith.divf %103, %104 : vector<8x32xf32>
    %106 = vector.extract_strided_slice %94 {offsets = [0, 32], sizes = [8, 32], strides = [1, 1]} : vector<8x96xf32> to vector<8x32xf32>
    %107 = vector.extract_strided_slice %97 {offsets = [0, 32], sizes = [8, 32], strides = [1, 1]} : vector<8x96xf32> to vector<8x32xf32>
    %108 = arith.addf %106, %107 : vector<8x32xf32>
    %109 = arith.negf %108 : vector<8x32xf32>
    %110 = math.exp %109 : vector<8x32xf32>
    %cst_53 = arith.constant 1.000000e+00 : f32
    %111 = vector.broadcast %cst_53 : f32 to vector<8x32xf32>
    %112 = arith.addf %111, %110 : vector<8x32xf32>
    %113 = arith.divf %111, %112 : vector<8x32xf32>
    %114 = vector.extract_strided_slice %94 {offsets = [0, 64], sizes = [8, 32], strides = [1, 1]} : vector<8x96xf32> to vector<8x32xf32>
    %115 = vector.extract_strided_slice %97 {offsets = [0, 64], sizes = [8, 32], strides = [1, 1]} : vector<8x96xf32> to vector<8x32xf32>
    %116 = vector.broadcast %10 : vector<1x32xf32> to vector<8x32xf32>
    %117 = arith.addf %115, %116 : vector<8x32xf32>
    %118 = arith.mulf %105, %117 : vector<8x32xf32>
    %119 = arith.addf %114, %118 : vector<8x32xf32>
    %120 = math.tanh %119 : vector<8x32xf32>
    %cst_54 = arith.constant 1.000000e+00 : f32
    %121 = vector.broadcast %cst_54 : f32 to vector<8x32xf32>
    %122 = arith.subf %121, %113 : vector<8x32xf32>
    %123 = arith.mulf %122, %120 : vector<8x32xf32>
    %124 = arith.mulf %113, %96 : vector<8x32xf32>
    %125 = arith.addf %123, %124 : vector<8x32xf32>
    %c0_55 = arith.constant 0 : index
    %c0_56 = arith.constant 0 : index
    %c0_57 = arith.constant 0 : index
    %126 = vector.load %arg18[%c0_55, %c0_56, %c0_57] : memref<2x8x32xf32, #tpu.memory_space<vmem>>, vector<1x8x32xf32>
    %127 = vector.shape_cast %126 : vector<1x8x32xf32> to vector<8x32xf32>
    %128 = vector.shape_cast %125 : vector<8x32xf32> to vector<1x8x32xf32>
    tpu.vector_store %arg18[%c0_55, %c0_56, %c0_57], %128 {strides = array<i32>} : memref<2x8x32xf32, #tpu.memory_space<vmem>>, vector<1x8x32xf32>,
    %cst_58 = arith.constant dense<0.000000e+00> : vector<8x96xf32>
    %129 = tpu.matmul %125, %11, %cst_58 {dimension_numbers = #tpu.dot_dimension_numbers<[1], [0], [0], [1], [0, 0, 1, 1], [], []>} : vector<8x32xf32>, vector<32x96xf32>, vector<8x96xf32> -> vector<8x96xf32>
    %130 = vector.broadcast %12 : vector<1x96xf32> to vector<8x96xf32>
    %131 = arith.addf %129, %130 : vector<8x96xf32>
    %c1_59 = arith.constant 1 : index
    %c0_60 = arith.constant 0 : index
    %c0_61 = arith.constant 0 : index
    %132 = vector.load %arg18[%c1_59, %c0_60, %c0_61] : memref<2x8x32xf32, #tpu.memory_space<vmem>>, vector<1x8x32xf32>
    %133 = vector.shape_cast %132 : vector<1x8x32xf32> to vector<8x32xf32>
    %cst_62 = arith.constant dense<0.000000e+00> : vector<8x96xf32>
    %134 = tpu.matmul %133, %13, %cst_62 {dimension_numbers = #tpu.dot_dimension_numbers<[1], [0], [0], [1], [0, 0, 1, 1], [], []>} : vector<8x32xf32>, vector<32x96xf32>, vector<8x96xf32> -> vector<8x96xf32>
    %135 = vector.extract_strided_slice %131 {offsets = [0, 0], sizes = [8, 32], strides = [1, 1]} : vector<8x96xf32> to vector<8x32xf32>
    %136 = vector.extract_strided_slice %134 {offsets = [0, 0], sizes = [8, 32], strides = [1, 1]} : vector<8x96xf32> to vector<8x32xf32>
    %137 = arith.addf %135, %136 : vector<8x32xf32>
    %138 = arith.negf %137 : vector<8x32xf32>
    %139 = math.exp %138 : vector<8x32xf32>
    %cst_63 = arith.constant 1.000000e+00 : f32
    %140 = vector.broadcast %cst_63 : f32 to vector<8x32xf32>
    %141 = arith.addf %140, %139 : vector<8x32xf32>
    %142 = arith.divf %140, %141 : vector<8x32xf32>
    %143 = vector.extract_strided_slice %131 {offsets = [0, 32], sizes = [8, 32], strides = [1, 1]} : vector<8x96xf32> to vector<8x32xf32>
    %144 = vector.extract_strided_slice %134 {offsets = [0, 32], sizes = [8, 32], strides = [1, 1]} : vector<8x96xf32> to vector<8x32xf32>
    %145 = arith.addf %143, %144 : vector<8x32xf32>
    %146 = arith.negf %145 : vector<8x32xf32>
    %147 = math.exp %146 : vector<8x32xf32>
    %cst_64 = arith.constant 1.000000e+00 : f32
    %148 = vector.broadcast %cst_64 : f32 to vector<8x32xf32>
    %149 = arith.addf %148, %147 : vector<8x32xf32>
    %150 = arith.divf %148, %149 : vector<8x32xf32>
    %151 = vector.extract_strided_slice %131 {offsets = [0, 64], sizes = [8, 32], strides = [1, 1]} : vector<8x96xf32> to vector<8x32xf32>
    %152 = vector.extract_strided_slice %134 {offsets = [0, 64], sizes = [8, 32], strides = [1, 1]} : vector<8x96xf32> to vector<8x32xf32>
    %153 = vector.broadcast %14 : vector<1x32xf32> to vector<8x32xf32>
    %154 = arith.addf %152, %153 : vector<8x32xf32>
    %155 = arith.mulf %142, %154 : vector<8x32xf32>
    %156 = arith.addf %151, %155 : vector<8x32xf32>
    %157 = math.tanh %156 : vector<8x32xf32>
    %cst_65 = arith.constant 1.000000e+00 : f32
    %158 = vector.broadcast %cst_65 : f32 to vector<8x32xf32>
    %159 = arith.subf %158, %150 : vector<8x32xf32>
    %160 = arith.mulf %159, %157 : vector<8x32xf32>
    %161 = arith.mulf %150, %133 : vector<8x32xf32>
    %162 = arith.addf %160, %161 : vector<8x32xf32>
    %c1_66 = arith.constant 1 : index
    %c0_67 = arith.constant 0 : index
    %c0_68 = arith.constant 0 : index
    %163 = vector.load %arg18[%c1_66, %c0_67, %c0_68] : memref<2x8x32xf32, #tpu.memory_space<vmem>>, vector<1x8x32xf32>
    %164 = vector.shape_cast %163 : vector<1x8x32xf32> to vector<8x32xf32>
    %165 = vector.shape_cast %162 : vector<8x32xf32> to vector<1x8x32xf32>
    tpu.vector_store %arg18[%c1_66, %c0_67, %c0_68], %165 {strides = array<i32>} : memref<2x8x32xf32, #tpu.memory_space<vmem>>, vector<1x8x32xf32>,
    %c1_69 = arith.constant 1 : index
    %c0_70 = arith.constant 0 : index
    %c0_71 = arith.constant 0 : index
    %166 = vector.load %arg19[%c1_69, %c0_70, %c0_71] : memref<4x8x32xf32, #tpu.memory_space<vmem>>, vector<1x8x32xf32>
    %167 = vector.shape_cast %166 : vector<1x8x32xf32> to vector<8x32xf32>
    %168 = vector.shape_cast %162 : vector<8x32xf32> to vector<1x8x32xf32>
    tpu.vector_store %arg19[%c1_69, %c0_70, %c0_71], %168 {strides = array<i32>} : memref<4x8x32xf32, #tpu.memory_space<vmem>>, vector<1x8x32xf32>,
    %169 = vector.extract_strided_slice %16 {offsets = [16, 0], sizes = [8, 96], strides = [1, 1]} : vector<32x96xf32> to vector<8x96xf32>
    %170 = arith.addf %169, %5 : vector<8x96xf32>
    %c0_72 = arith.constant 0 : index
    %c0_73 = arith.constant 0 : index
    %c0_74 = arith.constant 0 : index
    %171 = vector.load %arg18[%c0_72, %c0_73, %c0_74] : memref<2x8x32xf32, #tpu.memory_space<vmem>>, vector<1x8x32xf32>
    %172 = vector.shape_cast %171 : vector<1x8x32xf32> to vector<8x32xf32>
    %cst_75 = arith.constant dense<0.000000e+00> : vector<8x96xf32>
    %173 = tpu.matmul %172, %9, %cst_75 {dimension_numbers = #tpu.dot_dimension_numbers<[1], [0], [0], [1], [0, 0, 1, 1], [], []>} : vector<8x32xf32>, vector<32x96xf32>, vector<8x96xf32> -> vector<8x96xf32>
    %174 = vector.extract_strided_slice %170 {offsets = [0, 0], sizes = [8, 32], strides = [1, 1]} : vector<8x96xf32> to vector<8x32xf32>
    %175 = vector.extract_strided_slice %173 {offsets = [0, 0], sizes = [8, 32], strides = [1, 1]} : vector<8x96xf32> to vector<8x32xf32>
    %176 = arith.addf %174, %175 : vector<8x32xf32>
    %177 = arith.negf %176 : vector<8x32xf32>
    %178 = math.exp %177 : vector<8x32xf32>
    %cst_76 = arith.constant 1.000000e+00 : f32
    %179 = vector.broadcast %cst_76 : f32 to vector<8x32xf32>
    %180 = arith.addf %179, %178 : vector<8x32xf32>
    %181 = arith.divf %179, %180 : vector<8x32xf32>
    %182 = vector.extract_strided_slice %170 {offsets = [0, 32], sizes = [8, 32], strides = [1, 1]} : vector<8x96xf32> to vector<8x32xf32>
    %183 = vector.extract_strided_slice %173 {offsets = [0, 32], sizes = [8, 32], strides = [1, 1]} : vector<8x96xf32> to vector<8x32xf32>
    %184 = arith.addf %182, %183 : vector<8x32xf32>
    %185 = arith.negf %184 : vector<8x32xf32>
    %186 = math.exp %185 : vector<8x32xf32>
    %cst_77 = arith.constant 1.000000e+00 : f32
    %187 = vector.broadcast %cst_77 : f32 to vector<8x32xf32>
    %188 = arith.addf %187, %186 : vector<8x32xf32>
    %189 = arith.divf %187, %188 : vector<8x32xf32>
    %190 = vector.extract_strided_slice %170 {offsets = [0, 64], sizes = [8, 32], strides = [1, 1]} : vector<8x96xf32> to vector<8x32xf32>
    %191 = vector.extract_strided_slice %173 {offsets = [0, 64], sizes = [8, 32], strides = [1, 1]} : vector<8x96xf32> to vector<8x32xf32>
    %192 = vector.broadcast %10 : vector<1x32xf32> to vector<8x32xf32>
    %193 = arith.addf %191, %192 : vector<8x32xf32>
    %194 = arith.mulf %181, %193 : vector<8x32xf32>
    %195 = arith.addf %190, %194 : vector<8x32xf32>
    %196 = math.tanh %195 : vector<8x32xf32>
    %cst_78 = arith.constant 1.000000e+00 : f32
    %197 = vector.broadcast %cst_78 : f32 to vector<8x32xf32>
    %198 = arith.subf %197, %189 : vector<8x32xf32>
    %199 = arith.mulf %198, %196 : vector<8x32xf32>
    %200 = arith.mulf %189, %172 : vector<8x32xf32>
    %201 = arith.addf %199, %200 : vector<8x32xf32>
    %c0_79 = arith.constant 0 : index
    %c0_80 = arith.constant 0 : index
    %c0_81 = arith.constant 0 : index
    %202 = vector.load %arg18[%c0_79, %c0_80, %c0_81] : memref<2x8x32xf32, #tpu.memory_space<vmem>>, vector<1x8x32xf32>
    %203 = vector.shape_cast %202 : vector<1x8x32xf32> to vector<8x32xf32>
    %204 = vector.shape_cast %201 : vector<8x32xf32> to vector<1x8x32xf32>
    tpu.vector_store %arg18[%c0_79, %c0_80, %c0_81], %204 {strides = array<i32>} : memref<2x8x32xf32, #tpu.memory_space<vmem>>, vector<1x8x32xf32>,
    %cst_82 = arith.constant dense<0.000000e+00> : vector<8x96xf32>
    %205 = tpu.matmul %201, %11, %cst_82 {dimension_numbers = #tpu.dot_dimension_numbers<[1], [0], [0], [1], [0, 0, 1, 1], [], []>} : vector<8x32xf32>, vector<32x96xf32>, vector<8x96xf32> -> vector<8x96xf32>
    %206 = vector.broadcast %12 : vector<1x96xf32> to vector<8x96xf32>
    %207 = arith.addf %205, %206 : vector<8x96xf32>
    %c1_83 = arith.constant 1 : index
    %c0_84 = arith.constant 0 : index
    %c0_85 = arith.constant 0 : index
    %208 = vector.load %arg18[%c1_83, %c0_84, %c0_85] : memref<2x8x32xf32, #tpu.memory_space<vmem>>, vector<1x8x32xf32>
    %209 = vector.shape_cast %208 : vector<1x8x32xf32> to vector<8x32xf32>
    %cst_86 = arith.constant dense<0.000000e+00> : vector<8x96xf32>
    %210 = tpu.matmul %209, %13, %cst_86 {dimension_numbers = #tpu.dot_dimension_numbers<[1], [0], [0], [1], [0, 0, 1, 1], [], []>} : vector<8x32xf32>, vector<32x96xf32>, vector<8x96xf32> -> vector<8x96xf32>
    %211 = vector.extract_strided_slice %207 {offsets = [0, 0], sizes = [8, 32], strides = [1, 1]} : vector<8x96xf32> to vector<8x32xf32>
    %212 = vector.extract_strided_slice %210 {offsets = [0, 0], sizes = [8, 32], strides = [1, 1]} : vector<8x96xf32> to vector<8x32xf32>
    %213 = arith.addf %211, %212 : vector<8x32xf32>
    %214 = arith.negf %213 : vector<8x32xf32>
    %215 = math.exp %214 : vector<8x32xf32>
    %cst_87 = arith.constant 1.000000e+00 : f32
    %216 = vector.broadcast %cst_87 : f32 to vector<8x32xf32>
    %217 = arith.addf %216, %215 : vector<8x32xf32>
    %218 = arith.divf %216, %217 : vector<8x32xf32>
    %219 = vector.extract_strided_slice %207 {offsets = [0, 32], sizes = [8, 32], strides = [1, 1]} : vector<8x96xf32> to vector<8x32xf32>
    %220 = vector.extract_strided_slice %210 {offsets = [0, 32], sizes = [8, 32], strides = [1, 1]} : vector<8x96xf32> to vector<8x32xf32>
    %221 = arith.addf %219, %220 : vector<8x32xf32>
    %222 = arith.negf %221 : vector<8x32xf32>
    %223 = math.exp %222 : vector<8x32xf32>
    %cst_88 = arith.constant 1.000000e+00 : f32
    %224 = vector.broadcast %cst_88 : f32 to vector<8x32xf32>
    %225 = arith.addf %224, %223 : vector<8x32xf32>
    %226 = arith.divf %224, %225 : vector<8x32xf32>
    %227 = vector.extract_strided_slice %207 {offsets = [0, 64], sizes = [8, 32], strides = [1, 1]} : vector<8x96xf32> to vector<8x32xf32>
    %228 = vector.extract_strided_slice %210 {offsets = [0, 64], sizes = [8, 32], strides = [1, 1]} : vector<8x96xf32> to vector<8x32xf32>
    %229 = vector.broadcast %14 : vector<1x32xf32> to vector<8x32xf32>
    %230 = arith.addf %228, %229 : vector<8x32xf32>
    %231 = arith.mulf %218, %230 : vector<8x32xf32>
    %232 = arith.addf %227, %231 : vector<8x32xf32>
    %233 = math.tanh %232 : vector<8x32xf32>
    %cst_89 = arith.constant 1.000000e+00 : f32
    %234 = vector.broadcast %cst_89 : f32 to vector<8x32xf32>
    %235 = arith.subf %234, %226 : vector<8x32xf32>
    %236 = arith.mulf %235, %233 : vector<8x32xf32>
    %237 = arith.mulf %226, %209 : vector<8x32xf32>
    %238 = arith.addf %236, %237 : vector<8x32xf32>
    %c1_90 = arith.constant 1 : index
    %c0_91 = arith.constant 0 : index
    %c0_92 = arith.constant 0 : index
    %239 = vector.load %arg18[%c1_90, %c0_91, %c0_92] : memref<2x8x32xf32, #tpu.memory_space<vmem>>, vector<1x8x32xf32>
    %240 = vector.shape_cast %239 : vector<1x8x32xf32> to vector<8x32xf32>
    %241 = vector.shape_cast %238 : vector<8x32xf32> to vector<1x8x32xf32>
    tpu.vector_store %arg18[%c1_90, %c0_91, %c0_92], %241 {strides = array<i32>} : memref<2x8x32xf32, #tpu.memory_space<vmem>>, vector<1x8x32xf32>,
    %c2 = arith.constant 2 : index
    %c0_93 = arith.constant 0 : index
    %c0_94 = arith.constant 0 : index
    %242 = vector.load %arg19[%c2, %c0_93, %c0_94] : memref<4x8x32xf32, #tpu.memory_space<vmem>>, vector<1x8x32xf32>
    %243 = vector.shape_cast %242 : vector<1x8x32xf32> to vector<8x32xf32>
    %244 = vector.shape_cast %238 : vector<8x32xf32> to vector<1x8x32xf32>
    tpu.vector_store %arg19[%c2, %c0_93, %c0_94], %244 {strides = array<i32>} : memref<4x8x32xf32, #tpu.memory_space<vmem>>, vector<1x8x32xf32>,
    %245 = vector.extract_strided_slice %16 {offsets = [24, 0], sizes = [8, 96], strides = [1, 1]} : vector<32x96xf32> to vector<8x96xf32>
    %246 = arith.addf %245, %5 : vector<8x96xf32>
    %c0_95 = arith.constant 0 : index
    %c0_96 = arith.constant 0 : index
    %c0_97 = arith.constant 0 : index
    %247 = vector.load %arg18[%c0_95, %c0_96, %c0_97] : memref<2x8x32xf32, #tpu.memory_space<vmem>>, vector<1x8x32xf32>
    %248 = vector.shape_cast %247 : vector<1x8x32xf32> to vector<8x32xf32>
    %cst_98 = arith.constant dense<0.000000e+00> : vector<8x96xf32>
    %249 = tpu.matmul %248, %9, %cst_98 {dimension_numbers = #tpu.dot_dimension_numbers<[1], [0], [0], [1], [0, 0, 1, 1], [], []>} : vector<8x32xf32>, vector<32x96xf32>, vector<8x96xf32> -> vector<8x96xf32>
    %250 = vector.extract_strided_slice %246 {offsets = [0, 0], sizes = [8, 32], strides = [1, 1]} : vector<8x96xf32> to vector<8x32xf32>
    %251 = vector.extract_strided_slice %249 {offsets = [0, 0], sizes = [8, 32], strides = [1, 1]} : vector<8x96xf32> to vector<8x32xf32>
    %252 = arith.addf %250, %251 : vector<8x32xf32>
    %253 = arith.negf %252 : vector<8x32xf32>
    %254 = math.exp %253 : vector<8x32xf32>
    %cst_99 = arith.constant 1.000000e+00 : f32
    %255 = vector.broadcast %cst_99 : f32 to vector<8x32xf32>
    %256 = arith.addf %255, %254 : vector<8x32xf32>
    %257 = arith.divf %255, %256 : vector<8x32xf32>
    %258 = vector.extract_strided_slice %246 {offsets = [0, 32], sizes = [8, 32], strides = [1, 1]} : vector<8x96xf32> to vector<8x32xf32>
    %259 = vector.extract_strided_slice %249 {offsets = [0, 32], sizes = [8, 32], strides = [1, 1]} : vector<8x96xf32> to vector<8x32xf32>
    %260 = arith.addf %258, %259 : vector<8x32xf32>
    %261 = arith.negf %260 : vector<8x32xf32>
    %262 = math.exp %261 : vector<8x32xf32>
    %cst_100 = arith.constant 1.000000e+00 : f32
    %263 = vector.broadcast %cst_100 : f32 to vector<8x32xf32>
    %264 = arith.addf %263, %262 : vector<8x32xf32>
    %265 = arith.divf %263, %264 : vector<8x32xf32>
    %266 = vector.extract_strided_slice %246 {offsets = [0, 64], sizes = [8, 32], strides = [1, 1]} : vector<8x96xf32> to vector<8x32xf32>
    %267 = vector.extract_strided_slice %249 {offsets = [0, 64], sizes = [8, 32], strides = [1, 1]} : vector<8x96xf32> to vector<8x32xf32>
    %268 = vector.broadcast %10 : vector<1x32xf32> to vector<8x32xf32>
    %269 = arith.addf %267, %268 : vector<8x32xf32>
    %270 = arith.mulf %257, %269 : vector<8x32xf32>
    %271 = arith.addf %266, %270 : vector<8x32xf32>
    %272 = math.tanh %271 : vector<8x32xf32>
    %cst_101 = arith.constant 1.000000e+00 : f32
    %273 = vector.broadcast %cst_101 : f32 to vector<8x32xf32>
    %274 = arith.subf %273, %265 : vector<8x32xf32>
    %275 = arith.mulf %274, %272 : vector<8x32xf32>
    %276 = arith.mulf %265, %248 : vector<8x32xf32>
    %277 = arith.addf %275, %276 : vector<8x32xf32>
    %c0_102 = arith.constant 0 : index
    %c0_103 = arith.constant 0 : index
    %c0_104 = arith.constant 0 : index
    %278 = vector.load %arg18[%c0_102, %c0_103, %c0_104] : memref<2x8x32xf32, #tpu.memory_space<vmem>>, vector<1x8x32xf32>
    %279 = vector.shape_cast %278 : vector<1x8x32xf32> to vector<8x32xf32>
    %280 = vector.shape_cast %277 : vector<8x32xf32> to vector<1x8x32xf32>
    tpu.vector_store %arg18[%c0_102, %c0_103, %c0_104], %280 {strides = array<i32>} : memref<2x8x32xf32, #tpu.memory_space<vmem>>, vector<1x8x32xf32>,
    %cst_105 = arith.constant dense<0.000000e+00> : vector<8x96xf32>
    %281 = tpu.matmul %277, %11, %cst_105 {dimension_numbers = #tpu.dot_dimension_numbers<[1], [0], [0], [1], [0, 0, 1, 1], [], []>} : vector<8x32xf32>, vector<32x96xf32>, vector<8x96xf32> -> vector<8x96xf32>
    %282 = vector.broadcast %12 : vector<1x96xf32> to vector<8x96xf32>
    %283 = arith.addf %281, %282 : vector<8x96xf32>
    %c1_106 = arith.constant 1 : index
    %c0_107 = arith.constant 0 : index
    %c0_108 = arith.constant 0 : index
    %284 = vector.load %arg18[%c1_106, %c0_107, %c0_108] : memref<2x8x32xf32, #tpu.memory_space<vmem>>, vector<1x8x32xf32>
    %285 = vector.shape_cast %284 : vector<1x8x32xf32> to vector<8x32xf32>
    %cst_109 = arith.constant dense<0.000000e+00> : vector<8x96xf32>
    %286 = tpu.matmul %285, %13, %cst_109 {dimension_numbers = #tpu.dot_dimension_numbers<[1], [0], [0], [1], [0, 0, 1, 1], [], []>} : vector<8x32xf32>, vector<32x96xf32>, vector<8x96xf32> -> vector<8x96xf32>
    %287 = vector.extract_strided_slice %283 {offsets = [0, 0], sizes = [8, 32], strides = [1, 1]} : vector<8x96xf32> to vector<8x32xf32>
    %288 = vector.extract_strided_slice %286 {offsets = [0, 0], sizes = [8, 32], strides = [1, 1]} : vector<8x96xf32> to vector<8x32xf32>
    %289 = arith.addf %287, %288 : vector<8x32xf32>
    %290 = arith.negf %289 : vector<8x32xf32>
    %291 = math.exp %290 : vector<8x32xf32>
    %cst_110 = arith.constant 1.000000e+00 : f32
    %292 = vector.broadcast %cst_110 : f32 to vector<8x32xf32>
    %293 = arith.addf %292, %291 : vector<8x32xf32>
    %294 = arith.divf %292, %293 : vector<8x32xf32>
    %295 = vector.extract_strided_slice %283 {offsets = [0, 32], sizes = [8, 32], strides = [1, 1]} : vector<8x96xf32> to vector<8x32xf32>
    %296 = vector.extract_strided_slice %286 {offsets = [0, 32], sizes = [8, 32], strides = [1, 1]} : vector<8x96xf32> to vector<8x32xf32>
    %297 = arith.addf %295, %296 : vector<8x32xf32>
    %298 = arith.negf %297 : vector<8x32xf32>
    %299 = math.exp %298 : vector<8x32xf32>
    %cst_111 = arith.constant 1.000000e+00 : f32
    %300 = vector.broadcast %cst_111 : f32 to vector<8x32xf32>
    %301 = arith.addf %300, %299 : vector<8x32xf32>
    %302 = arith.divf %300, %301 : vector<8x32xf32>
    %303 = vector.extract_strided_slice %283 {offsets = [0, 64], sizes = [8, 32], strides = [1, 1]} : vector<8x96xf32> to vector<8x32xf32>
    %304 = vector.extract_strided_slice %286 {offsets = [0, 64], sizes = [8, 32], strides = [1, 1]} : vector<8x96xf32> to vector<8x32xf32>
    %305 = vector.broadcast %14 : vector<1x32xf32> to vector<8x32xf32>
    %306 = arith.addf %304, %305 : vector<8x32xf32>
    %307 = arith.mulf %294, %306 : vector<8x32xf32>
    %308 = arith.addf %303, %307 : vector<8x32xf32>
    %309 = math.tanh %308 : vector<8x32xf32>
    %cst_112 = arith.constant 1.000000e+00 : f32
    %310 = vector.broadcast %cst_112 : f32 to vector<8x32xf32>
    %311 = arith.subf %310, %302 : vector<8x32xf32>
    %312 = arith.mulf %311, %309 : vector<8x32xf32>
    %313 = arith.mulf %302, %285 : vector<8x32xf32>
    %314 = arith.addf %312, %313 : vector<8x32xf32>
    %c1_113 = arith.constant 1 : index
    %c0_114 = arith.constant 0 : index
    %c0_115 = arith.constant 0 : index
    %315 = vector.load %arg18[%c1_113, %c0_114, %c0_115] : memref<2x8x32xf32, #tpu.memory_space<vmem>>, vector<1x8x32xf32>
    %316 = vector.shape_cast %315 : vector<1x8x32xf32> to vector<8x32xf32>
    %317 = vector.shape_cast %314 : vector<8x32xf32> to vector<1x8x32xf32>
    tpu.vector_store %arg18[%c1_113, %c0_114, %c0_115], %317 {strides = array<i32>} : memref<2x8x32xf32, #tpu.memory_space<vmem>>, vector<1x8x32xf32>,
    %c3 = arith.constant 3 : index
    %c0_116 = arith.constant 0 : index
    %c0_117 = arith.constant 0 : index
    %318 = vector.load %arg19[%c3, %c0_116, %c0_117] : memref<4x8x32xf32, #tpu.memory_space<vmem>>, vector<1x8x32xf32>
    %319 = vector.shape_cast %318 : vector<1x8x32xf32> to vector<8x32xf32>
    %320 = vector.shape_cast %314 : vector<8x32xf32> to vector<1x8x32xf32>
    tpu.vector_store %arg19[%c3, %c0_116, %c0_117], %320 {strides = array<i32>} : memref<4x8x32xf32, #tpu.memory_space<vmem>>, vector<1x8x32xf32>,
    %c0_118 = arith.constant 0 : index
    %c0_119 = arith.constant 0 : index
    %c0_120 = arith.constant 0 : index
    %321 = vector.load %arg19[%c0_118, %c0_119, %c0_120] : memref<4x8x32xf32, #tpu.memory_space<vmem>>, vector<4x8x32xf32>
    %322 = vector.shape_cast %321 : vector<4x8x32xf32> to vector<32x32xf32>
    %cst_121 = arith.constant dense<0.000000e+00> : vector<32x128xf32>
    %323 = tpu.matmul %322, %7, %cst_121 {dimension_numbers = #tpu.dot_dimension_numbers<[1], [0], [0], [1], [0, 0, 1, 1], [], []>} : vector<32x32xf32>, vector<32x128xf32>, vector<32x128xf32> -> vector<32x128xf32>
    %cst_122 = arith.constant dense<0.000000e+00> : vector<32x128xf32>
    %324 = tpu.matmul %4, %8, %cst_122 {dimension_numbers = #tpu.dot_dimension_numbers<[1], [0], [0], [1], [0, 0, 1, 1], [], []>} : vector<32x32xf32>, vector<32x128xf32>, vector<32x128xf32> -> vector<32x128xf32>
    %325 = arith.addf %323, %324 : vector<32x128xf32>
    %326 = vector.shape_cast %325 : vector<32x128xf32> to vector<4x8x128xf32>
    %327 = vector.shape_cast %6 : vector<8x128xf32> to vector<1x8x128xf32>
    %328 = vector.broadcast %327 : vector<1x8x128xf32> to vector<4x8x128xf32>
    %329 = arith.addf %326, %328 : vector<4x8x128xf32>
    %cst_123 = arith.constant dense<0xFF800000> : vector<4x8xf32>
    %330 = vector.multi_reduction <maximumf>, %329, %cst_123 [2] : vector<4x8x128xf32> to vector<4x8xf32>
    %331 = vector.shape_cast %330 : vector<4x8xf32> to vector<4x8x1xf32>
    %332 = vector.broadcast %331 : vector<4x8x1xf32> to vector<4x8x128xf32>
    %333 = arith.subf %329, %332 : vector<4x8x128xf32>
    %334 = math.exp %333 : vector<4x8x128xf32>
    %cst_124 = arith.constant dense<0.000000e+00> : vector<4x8xf32>
    %335 = vector.multi_reduction <add>, %334, %cst_124 [2] : vector<4x8x128xf32> to vector<4x8xf32>
    %336 = vector.shape_cast %335 : vector<4x8xf32> to vector<4x8x1xf32>
    %337 = math.log %336 : vector<4x8x1xf32>
    %338 = arith.addf %331, %337 : vector<4x8x1xf32>
    %339 = vector.broadcast %338 : vector<4x8x1xf32> to vector<4x8x128xf32>
    %340 = arith.subf %329, %339 : vector<4x8x128xf32>
    %c0_125 = arith.constant 0 : index
    %c0_126 = arith.constant 0 : index
    %c0_127 = arith.constant 0 : index
    %341 = vector.load %arg14[%c0_125, %c0_126, %c0_127] : memref<4x8x128xf32, #tpu.memory_space<vmem>>, vector<4x8x128xf32>
    tpu.vector_store %arg14[%c0_125, %c0_126, %c0_127], %340 {strides = array<i32>} : memref<4x8x128xf32, #tpu.memory_space<vmem>>, vector<4x8x128xf32>,
    %c0_128 = arith.constant 0 : index
    %c0_129 = arith.constant 0 : index
    %c0_130 = arith.constant 0 : index
    %342 = vector.load %arg15[%c0_128, %c0_129, %c0_130] : memref<4x8x128xf32, #tpu.memory_space<vmem>>, vector<4x8x128xf32>
    tpu.vector_store %arg15[%c0_128, %c0_129, %c0_130], %329 {strides = array<i32>} : memref<4x8x128xf32, #tpu.memory_space<vmem>>, vector<4x8x128xf32>,
    %c1_i32 = arith.constant 1 : i32
    %343 = arith.cmpi eq, %arg1, %c1_i32 : i32
    %344 = arith.extui %343 : i1 to i32
    %c0_i32_131 = arith.constant 0 : i32
    %345 = arith.cmpi ne, %344, %c0_i32_131 : i32
    scf.if %345 {
      %c0_132 = arith.constant 0 : index
      %c0_133 = arith.constant 0 : index
      %c0_134 = arith.constant 0 : index
      %346 = vector.load %arg18[%c0_132, %c0_133, %c0_134] : memref<2x8x32xf32, #tpu.memory_space<vmem>>, vector<2x8x32xf32>
      %c0_135 = arith.constant 0 : index
      %c0_136 = arith.constant 0 : index
      %c0_137 = arith.constant 0 : index
      %347 = vector.load %arg16[%c0_135, %c0_136, %c0_137] : memref<2x8x32xf32, #tpu.memory_space<vmem>>, vector<2x8x32xf32>
      tpu.vector_store %arg16[%c0_135, %c0_136, %c0_137], %346 {strides = array<i32>} : memref<2x8x32xf32, #tpu.memory_space<vmem>>, vector<2x8x32xf32>,
      %c1_138 = arith.constant 1 : index
      %c0_139 = arith.constant 0 : index
      %c0_140 = arith.constant 0 : index
      %348 = vector.load %arg18[%c1_138, %c0_139, %c0_140] : memref<2x8x32xf32, #tpu.memory_space<vmem>>, vector<1x8x32xf32>
      %349 = vector.shape_cast %348 : vector<1x8x32xf32> to vector<8x32xf32>
      %c0_141 = arith.constant 0 : index
      %c0_142 = arith.constant 0 : index
      %350 = vector.load %arg17[%c0_141, %c0_142] : memref<8x32xf32, #tpu.memory_space<vmem>>, vector<8x32xf32>
      tpu.vector_store %arg17[%c0_141, %c0_142], %349 {strides = array<i32>} : memref<8x32xf32, #tpu.memory_space<vmem>>, vector<8x32xf32>,
    } else {
    }
    return
  }
  func.func @transform_0(%arg0: i32, %arg1: i32) -> (i32, i32, i32) {
    %c0_i32 = arith.constant 0 : i32
    %c0_i32_0 = arith.constant 0 : i32
    return %arg1, %arg0, %c0_i32 : i32, i32, i32
  }
  func.func @transform_1(%arg0: i32, %arg1: i32) -> (i32, i32) {
    %c0_i32 = arith.constant 0 : i32
    %c0_i32_0 = arith.constant 0 : i32
    return %arg0, %c0_i32 : i32, i32
  }
  func.func @transform_2(%arg0: i32, %arg1: i32) -> (i32, i32) {
    %c0_i32 = arith.constant 0 : i32
    %c0_i32_0 = arith.constant 0 : i32
    return %arg0, %c0_i32 : i32, i32
  }
  func.func @transform_3(%arg0: i32, %arg1: i32) -> (i32, i32) {
    %c0_i32 = arith.constant 0 : i32
    %c0_i32_0 = arith.constant 0 : i32
    %c0_i32_1 = arith.constant 0 : i32
    return %c0_i32, %c0_i32_0 : i32, i32
  }
  func.func @transform_4(%arg0: i32, %arg1: i32) -> (i32, i32) {
    %c0_i32 = arith.constant 0 : i32
    %c0_i32_0 = arith.constant 0 : i32
    %c0_i32_1 = arith.constant 0 : i32
    return %c0_i32, %c0_i32_0 : i32, i32
  }
  func.func @transform_5(%arg0: i32, %arg1: i32) -> (i32, i32) {
    %c0_i32 = arith.constant 0 : i32
    %c0_i32_0 = arith.constant 0 : i32
    %c0_i32_1 = arith.constant 0 : i32
    return %c0_i32, %c0_i32_0 : i32, i32
  }
  func.func @transform_6(%arg0: i32, %arg1: i32) -> (i32, i32) {
    %c0_i32 = arith.constant 0 : i32
    %c0_i32_0 = arith.constant 0 : i32
    %c0_i32_1 = arith.constant 0 : i32
    return %c0_i32, %c0_i32_0 : i32, i32
  }
  func.func @transform_7(%arg0: i32, %arg1: i32) -> (i32, i32) {
    %c0_i32 = arith.constant 0 : i32
    %c0_i32_0 = arith.constant 0 : i32
    %c0_i32_1 = arith.constant 0 : i32
    return %c0_i32, %c0_i32_0 : i32, i32
  }
  func.func @transform_8(%arg0: i32, %arg1: i32) -> (i32, i32) {
    %c0_i32 = arith.constant 0 : i32
    %c0_i32_0 = arith.constant 0 : i32
    %c0_i32_1 = arith.constant 0 : i32
    return %c0_i32, %c0_i32_0 : i32, i32
  }
  func.func @transform_9(%arg0: i32, %arg1: i32) -> (i32, i32) {
    %c0_i32 = arith.constant 0 : i32
    %c0_i32_0 = arith.constant 0 : i32
    %c0_i32_1 = arith.constant 0 : i32
    return %c0_i32, %c0_i32_0 : i32, i32
  }
  func.func @transform_10(%arg0: i32, %arg1: i32) -> (i32, i32) {
    %c0_i32 = arith.constant 0 : i32
    %c0_i32_0 = arith.constant 0 : i32
    %c0_i32_1 = arith.constant 0 : i32
    return %c0_i32, %c0_i32_0 : i32, i32
  }
  func.func @transform_11(%arg0: i32, %arg1: i32) -> (i32, i32) {
    %c0_i32 = arith.constant 0 : i32
    %c0_i32_0 = arith.constant 0 : i32
    %c0_i32_1 = arith.constant 0 : i32
    return %c0_i32, %c0_i32_0 : i32, i32
  }
  func.func @transform_12(%arg0: i32, %arg1: i32) -> (i32, i32, i32) {
    %c0_i32 = arith.constant 0 : i32
    %c0_i32_0 = arith.constant 0 : i32
    return %arg1, %arg0, %c0_i32 : i32, i32, i32
  }
  func.func @transform_13(%arg0: i32, %arg1: i32) -> (i32, i32, i32) {
    %c0_i32 = arith.constant 0 : i32
    %c0_i32_0 = arith.constant 0 : i32
    return %arg1, %arg0, %c0_i32 : i32, i32, i32
  }
  func.func @transform_14(%arg0: i32, %arg1: i32) -> (i32, i32, i32) {
    %c0_i32 = arith.constant 0 : i32
    %c0_i32_0 = arith.constant 0 : i32
    %c0_i32_1 = arith.constant 0 : i32
    return %c0_i32, %arg0, %c0_i32_0 : i32, i32, i32
  }
  func.func @transform_15(%arg0: i32, %arg1: i32) -> (i32, i32) {
    %c0_i32 = arith.constant 0 : i32
    %c0_i32_0 = arith.constant 0 : i32
    return %arg0, %c0_i32 : i32, i32
  }
}

</mosaic_0001>

<bundles_post_ra>
// kernel: tpu_custom_call.1
= control target key start
LH: loop header
LB: loop body
LE: loop exit
PB: predicated region body
PF: predicated region fallthrough
CT: control target
= control target key end

     0   :  { %s3320_s0 = inlined_call_operand.hbm [shape: f32[8,8,32], index: 0, kind: input, shape index: {}]   ;;  %s3321_s1 = inlined_call_operand.hbm [shape: f32[8,96], index: 1, kind: input, shape index: {}]   ;;  %s3322_s2 = inlined_call_operand.hbm [shape: f32[8,128], index: 2, kind: input, shape index: {}]   ;;  %s3323_s3 = inlined_call_operand.hbm [shape: f32[32,96], index: 3, kind: input, shape index: {}]   ;;  %s3324_s4 = inlined_call_operand.hbm [shape: f32[32,96], index: 4, kind: input, shape index: {}]   ;;  %s3325_s5 = inlined_call_operand.vmem [shape: f32[1,32], index: 5, kind: input, shape index: {}]   ;;  %s3326_s6 = inlined_call_operand.hbm [shape: f32[32,96], index: 6, kind: input, shape index: {}]   ;;  %s3327_s7 = inlined_call_operand.vmem [shape: f32[1,96], index: 7, kind: input, shape index: {}]   ;;  %s3328_s8 = inlined_call_operand.hbm [shape: f32[32,96], index: 8, kind: input, shape index: {}]   ;;  %s3329_s9 = inlined_call_operand.vmem [shape: f32[1,32], index: 9, kind: input, shape index: {}]   ;;  %s3330_s10 = inlined_call_operand.hbm [shape: f32[32,128], index: 10, kind: input, shape index: {}]   ;;  %s3331_s11 = inlined_call_operand.hbm [shape: f32[32,128], index: 11, kind: input, shape index: {}]   ;;  %s3332_s12 = inlined_call_operand.hbm [shape: f32[8,8,128], index: 12, kind: output, shape index: {0}]   ;;  %s3333_s13 = inlined_call_operand.hbm [shape: f32[8,8,128], index: 13, kind: output, shape index: {1}]   ;;  %s3334_s14 = inlined_call_operand.hbm [shape: f32[2,8,32], index: 14, kind: output, shape index: {2}]   ;;  %s3335_s15 = inlined_call_operand.hbm [shape: f32[8,32], index: 15, kind: output, shape index: {3}]  }
   0x1   :  { %3342 = sst [smem:[#allocation34_spill]] %s3320_s0 }
   0x2   :  { %3343 = sst [smem:[#allocation35_spill]] %s3321_s1 }
   0x3   :  { %3344 = sst [smem:[#allocation36_spill]] %s3322_s2 }
   0x4   :  { %3345 = sst [smem:[#allocation37_spill]] %s3323_s3 }
   0x5   :  { %3346 = sst [smem:[#allocation38_spill]] %s3324_s4 }
   0x6   :  { %3347 = sst [smem:[#allocation39_spill]] %s3325_s5 }
   0x7   :  { %3348 = sst [smem:[#allocation40_spill]] %s3326_s6 }
   0x8   :  { %3349 = sst [smem:[#allocation41_spill]] %s3327_s7 }
   0x9   :  { %3350 = sst [smem:[#allocation42_spill]] %s3328_s8 }
   0xa   :  { %3351 = sst [smem:[#allocation43_spill]] %s3329_s9 }
   0xb   :  { %3352 = sst [smem:[#allocation44_spill]] %s3332_s12 }
   0xc   :  { %3353 = sst [smem:[#allocation45_spill]] %s3333_s13 }
   0xd   :  { %3354 = sst [smem:[#allocation46_spill]] %s3334_s14 }
   0xe   :  { %3355 = sst [smem:[#allocation47_spill]] %s3335_s15 }
   0xf   :  { %21 = vsyncpa [#allocation5], 0 }
  0x10   :  { %23 = vsyncpa [#allocation5 + $0x1], 0 }
  0x11   :  { %24 = vsyncpa [#allocation8], 0 }
  0x12   :  { %25 = vsyncpa [#allocation11], 0 }
  0x13   :  { %26 = vsyncpa [#allocation14], 0 }
  0x14   :  { %27 = vsyncpa [#allocation17], 0 }
  0x15   :  { %28 = vsyncpa [#allocation6], 0 }
  0x16   :  { %30 = vsyncpa [#allocation6 + $0x1], 0 }
  0x17   :  { %31 = vsyncpa [#allocation21], 0 }
  0x18   :  { %33 = vsyncpa [#allocation21 + $0x1], 0 }
  0x19   :  { %34 = vsyncpa [#allocation24], 0  ;;  %s2788_s18 = smov 0   ;;  %s2790_s19 = smov 0  }
  0x1a   :  { %s2792_s20 = smov 0   ;;  %s2794_s21 = smov 0  }
  0x1b   :  { %s2796_s22 = smov 0   ;;  %s2798_s23 = smov 0  }
  0x1c LB: > { %s2819_s24 = sadd.s32 4294967295, %s2688_s23   ;;  %p1905_p0 = scmp.ge.s32.totalorder %s2688_s23, 1  ;;  %s2688_s23 = sphi %s2798_s23, %s40_s23   ;;  %s2684_s22 = sphi %s2796_s22, %s3382_s22   ;;  %s2680_s21 = sphi %s2794_s21, %s3381_s21   ;;  %s2676_s20 = sphi %s2792_s20, %s3380_s20   ;;  %s2672_s19 = sphi %s2790_s19, %s3379_s19   ;;  %s2668_s18 = sphi %s2788_s18, %s3378_s18  }
  0x1d   : > { %p75_p1 = scmp.eq.s32.totalorder %s2819_s24, 0  ;;  %p434_p2 = scmp.lt.s32.totalorder %s2688_s23, 3 }
  0x1e   : > { %s3356_s1 = sld [smem:[#allocation35_spill]]  ;;  %p1914_p4 = scmp.ge.s32.totalorder %s2688_s23, 2 }
  0x1f   : > { %p2827_p3 = pnand %p1905_p0, %p434_p2  ;;  %s2690_s29 = smov [#allocation7]  }
  0x20   : > { %s450_s30 = sshll.u32 %s2690_s29, 4  ;;  %s3358_s3 = sld [smem:[#allocation37_spill]]  ;;  %s451_s30 = int_to_ptr.vmem [resolvable:$true] %s450_s30 }
  0x21   : > { %p2033_p5 = pneg %p2827_p3  ;;  %s2691_s26 = smov [#allocation10]  }
  0x22   : > { %s3338_s29 = smov 128   ;;  %s3339_s14 = smov 8  }
  0x23   : > { %p2839_p6 = pnand %p2033_p5, %p75_p1  ;;  %s3360_s6 = sld [smem:[#allocation40_spill]] }
  0x24   : > { %s448_s27 = sshll.u32 %s3356_s1, 4  ;;  %s475_s1 = sshll.u32 %s2691_s26, 4  ;;  %s449_s27 = int_to_ptr.hbm [resolvable:$true] %s448_s27  ;;  %s476_s1 = int_to_ptr.vmem [resolvable:$true] %s475_s1 }
  0x25   : > { %2036 = dma.hbm_to_vmem [thread:$0]  (!%p2839_p6), %s449_s27, 128, %s451_s30, [#allocation8]  }
  0x26   : > { %s473_s15 = sshll.u32 %s3358_s3, 4  ;;  %s2694_s12 = smov [#allocation13]   ;;  %s474_s15 = int_to_ptr.hbm [resolvable:$true] %s473_s15 }
  0x27   : > { %2042 = dma.hbm_to_vmem [thread:$0]  (!%p2839_p6), %s474_s15, 512, %s476_s1, [#allocation11], %s3338_s29, %s3338_s29, %s3339_s14  }
  0x28   : > { %s506_s13 = sshll.u32 %s2694_s12, 4  ;;  %s538_s30 = sshll.u32 %s3330_s10, 4  ;;  %s507_s13 = int_to_ptr.vmem [resolvable:$true] %s506_s13  ;;  %s539_s30 = int_to_ptr.hbm [resolvable:$true] %s538_s30 }
  0x29   : > { %s504_s3 = sshll.u32 %s3360_s6, 4  ;;  %s2695_s1 = smov [#allocation16]   ;;  %s505_s3 = int_to_ptr.hbm [resolvable:$true] %s504_s3 }
  0x2a   : > { %2048 = dma.hbm_to_vmem [thread:$0]  (!%p2839_p6), %s505_s3, 512, %s507_s13, [#allocation14], %s3338_s29, %s3338_s29, %s3339_s14  }
  0x2b   : > { %s540_s15 = sshll.u32 %s2695_s1, 4  ;;  %s3361_s2 = sld [smem:[#allocation36_spill]]  ;;  %s541_s15 = int_to_ptr.vmem [resolvable:$true] %s540_s15 }
  0x2c   : > { %2054 = dma.hbm_to_vmem [thread:$0]  (!%p2839_p6), %s539_s30, 512, %s541_s15, [#allocation17], %s3338_s29, %s3338_s29, %s3339_s14  }
  0x2d   : > { %s3362_s4 = sld [smem:[#allocation38_spill]]  ;;  %s2696_s3 = smov [#allocation9]  }
  0x2e   : > { %s464_s13 = sshll.u32 %s2696_s3, 4  ;;  %s2697_s7 = smov [#allocation12]   ;;  %s465_s13 = int_to_ptr.vmem [resolvable:$true] %s464_s13 }
  0x2f   : > { %s489_s1 = sshll.u32 %s2697_s7, 4  ;;  %s3363_s8 = sld [smem:[#allocation42_spill]]  ;;  %s490_s1 = int_to_ptr.vmem [resolvable:$true] %s489_s1 }
  0x30   : > { %s552_s12 = sshll.u32 %s3331_s11, 4  ;;  %s2698_s26 = smov [#allocation15]   ;;  %s553_s12 = int_to_ptr.hbm [resolvable:$true] %s552_s12 }
  0x31   : > { %s462_s17 = sshll.u32 %s3361_s2, 4  ;;  %s523_s2 = sshll.u32 %s2698_s26, 4  ;;  %s463_s17 = int_to_ptr.hbm [resolvable:$true] %s462_s17  ;;  %s524_s2 = int_to_ptr.vmem [resolvable:$true] %s523_s2 }
  0x32   : > { %2039 = dma.hbm_to_vmem [thread:$0]  (!%p2839_p6), %s463_s17, 128, %s465_s13, [#allocation8]  }
  0x33   : > { %s487_s27 = sshll.u32 %s3362_s4, 4  ;;  %s49_s13 = sadd.s32 1, %s2684_s22  ;;  %s488_s27 = int_to_ptr.hbm [resolvable:$true] %s487_s27 }
  0x34   : > { %2045 = dma.hbm_to_vmem [thread:$0]  (!%p2839_p6), %s488_s27, 512, %s490_s1, [#allocation11], %s3338_s29, %s3338_s29, %s3339_s14  }
  0x35   : > { %s521_s30 = sshll.u32 %s3363_s8, 4  ;;  %s2699_s27 = smov [#allocation18]   ;;  %s522_s30 = int_to_ptr.hbm [resolvable:$true] %s521_s30 }
  0x36   : > { %2051 = dma.hbm_to_vmem [thread:$0]  (!%p2839_p6), %s522_s30, 512, %s524_s2, [#allocation14], %s3338_s29, %s3338_s29, %s3339_s14  }
  0x37   : > { %s554_s3 = sshll.u32 %s2699_s27, 4  ;;  %s3340_s7 = sadd.s32 4294967294, %s2688_s23   ;;  %s555_s3 = int_to_ptr.vmem [resolvable:$true] %s554_s3 }
  0x38   : > { %2057 = dma.hbm_to_vmem [thread:$0]  (!%p2839_p6), %s553_s12, 512, %s555_s3, [#allocation17], %s3338_s29, %s3338_s29, %s3339_s14  }
  0x39   : > { %p50_p7 = scmp.ge.s32.totalorder %s49_s13, 2  ;;  %s61_s1 = sadd.s32 1, %s2676_s20 }
  0x3a   : > { %p68_p8 = scmp.ne.s32.totalorder %s2676_s20, %s2672_s19  ;;  %p69_p9 = scmp.eq.s32.totalorder %s2688_s23, 0 }
  0x3b   : > { %s3384_s13 = smov (%p50_p7, %s49_s13), 0  ;;  %p74_p10 = scmp.ne.s32.totalorder %s2672_s19, %s2668_s18 }
  0x3c   : > { %s56_s16 = ssub.s32 %s2684_s22, %s3384_s13  ;;  %p341_p11 = scmp.eq.s32.totalorder %s2819_s24, 1 }
  0x3d   : > { %p59_p12 = scmp.eq.s32.totalorder %s56_s16, 0  ;;  %p2910_p13 = por %p75_p1, %p74_p10 }
  0x3e   : > { %p2916_p0 = por %p341_p11, %p68_p8  ;;  %p347_p2 = scmp.eq.s32.totalorder %s3340_s7, 1 }
  0x3f   : > { %s2923_s15 = scalar_select %p59_p12, %s2676_s20, %s61_s1  }
  0x40   : > { %p70_p5 = por %p69_p9, %p68_p8  ;;  %p2925_p6 = por %p347_p2, %p74_p10 }
  0x41   : > { %s568_s12 = sand.u32 1, %s2676_s20   ;;  %s1976_s26 = sshll.u32 %s2684_s22, 5 }
  0x42   : > { %p2077_p7 = scmp.lt.s32.totalorder %s2688_s23, 2  ;;  %s1915_s2 = sshll.u32 %s568_s12, 5 }
  0x43   : > { %s3367_s0 = sld [smem:[#allocation34_spill]]  ;;  %s572_s14 = scalar_lea.vmem [#allocation4], %s1915_s2 }
  0x44   : > { %s581_s4 = sshll.u32 %s572_s14, 4  ;;  %p2059_p12 = pnand %p2077_p7, %p70_p5  ;;  %s582_s4 = int_to_ptr.vmem [resolvable:$true] %s581_s4 }
  0x45   : > { %s569_s1 = scalar_lea.sflag [#allocation5], %s568_s12  ;;  %s3368_s7 = smov 8  }
  0x46   : > { %s3369_s6 = smov 128   ;;  %s2941_s8 = sand.u32 (!%p2827_p3), 1, %s2672_s19  }
  0x47   : > { %593 = sbr.rel (%p2827_p3) target bundleno = 3395 (0xd43), region = 68  ;;  %s596_s2 = scalar_lea.sflag (!%p2827_p3), [#allocation5], %s2941_s8 }
  0x49   : > { %s578_s16 = scalar_lea.hbm %s3367_s0, %s1976_s26  ;;  %s1919_s26 = sshll.u32 (!%p2827_p3), %s2941_s8, 5 }
  0x4a   : > { %s579_s29 = sshll.u32 %s578_s16, 4  ;;  %s2945_s14 = scalar_lea.vmem (!%p2827_p3), [#allocation4], %s1919_s26  ;;  %s580_s29 = int_to_ptr.hbm [resolvable:$true] %s579_s29 }
  0x4b   : > { %2061 = dma.hbm_to_vmem [thread:$0]  (!%p2059_p12), %s580_s29, 512, %s582_s4, %s569_s1, %s3369_s6, %s3369_s6, %s3368_s7  }
  0x4c   : > { %2631 = dma.done.wait (%p2910_p13), %s596_s2, 512  }
  0x4d   : > { %2633 = vsyncadd (%p2910_p13), %s596_s2, 4294966784 }
  0x4e   : > { %2635 = dma.done.wait (%p75_p1), [#allocation8], 256  }
  0x4f   : > { %2637 = vsyncadd (%p75_p1), [#allocation8], 4294967040 }
  0x50   : > { %2639 = dma.done.wait (%p75_p1), [#allocation11], 1024  }
  0x51   : > { %2641 = vsyncadd (%p75_p1), [#allocation11], 4294966272 }
  0x52   : > { %2643 = dma.done.wait (%p75_p1), [#allocation14], 1024  }
  0x53   : > { %2645 = vsyncadd (%p75_p1), [#allocation14], 4294966272 }
  0x54   : > { %2647 = dma.done.wait (%p75_p1), [#allocation17], 1024  }
  0x55   : > { %2649 = vsyncadd (%p75_p1), [#allocation17], 4294966272  ;;  %s2967_s4 = scalar_lea.vmem [#allocation19], %s1919_s26  ;;  %s2969_s6 = scalar_lea.vmem [#allocation20], %s1919_s26 }
  0x56   : > { %p1930_p3 = scmp.ne.s32.totalorder %s2680_s21, 0 }
  0x58   : > { %698 = sbr.rel (%p1930_p3) target bundleno = 96 (0x60), region = 108 }
  0x5d   : > { %vm699_vm0 = vcmask 261120   ;;  %v2700_v0 = vmov 0.0  }
  0x5e   : > { %700 = vst.msk [vmem:[#allocation2] sm:$0xff] %vm699_vm0, %v2700_v0 }
  0x5f   : > { %701 = vst.msk [vmem:[#allocation2 + $0x8] sm:$0xff] %vm699_vm0, %v2700_v0 }
  0x60 PF: > { %v734_v1 = vld [vmem:[#allocation10 + $0x18] sm:$0xff]  ;;  %v733_v3 = vld [vmem:[#allocation10 + $0x10] sm:$0xff]  ;;  %v732_v5 = vld [vmem:[#allocation10 + $0x8] sm:$0xff]  ;;  %s3370_s5 = sld [smem:[#allocation39_spill]]  ;;  %s2701_s7 = smov 32   ;;  %vm735_vm1 = vcmask 261120  }
  0x61   : > { %v2972_v2 = vld [vmem:[#allocation12 + $0x18] sm:$0xff]  ;;  %760 = vmatpush.msra.mxu0 %v734_v1  ;;  %v2975_v4 = vld [vmem:[#allocation12 + $0x10] sm:$0xff]  ;;  %v2977_v6 = vld [vmem:[#allocation12 + $0x8] sm:$0xff]  ;;  %1979 = vmatpush.msra.mxu2 %v734_v1  ;;  %s2702_s25 = smov 64   ;;  %s2703_s12 = smov 96  }
  0x62   : > { %794 = vmatpush.msra.mxu1 %v2972_v2  ;;  %v731_v7 = vld [vmem:[#allocation10] sm:$0xff]  ;;  %v2988_v11 = vld [vmem:[%s2945_s14] sm:$0xff]  ;;  %v3012_v37 = vld [vmem:[#allocation15 + $0x18] sm:$0xff]  ;;  %s3371_s9 = sld [smem:[#allocation43_spill]]  ;;  %p1963_p1 = scmp.ne.s32.totalorder %s2680_s21, 1 }
  0x63   : > { %761 = vmatpush.msra.mxu0 %v733_v3  ;;  %v2983_v10 = vld [vmem:[#allocation12] sm:$0xff]  ;;  %1980 = vmatpush.msra.mxu2 %v733_v3  ;;  %v3007_v15 = vld [vmem:[#allocation7] sm:$0xff]  ;;  %v3017_v39 = vld [vmem:[#allocation15 + $0x8] sm:$0xff]  ;;  %s3372_s26 = sld [smem:[#allocation41_spill]] }
  0x64   : > { %795 = vmatpush.msra.mxu1 %v2975_v4  ;;  %897 = vmatpush.msra.mxu3 %v3012_v37  ;;  %v3015_v38 = vld [vmem:[#allocation15 + $0x10] sm:$0xff]  ;;  %v3024_v41 = vld [vmem:[%s2945_s14 + $0x10] sm:$0xff]  ;;  %v3030_v43 = vld [vmem:[#allocation13 + $0x18] sm:$0xff] }
  0x65   : > { %v778_v8 = vld [vmem:[#allocation2] sm:$0xff]  ;;  %762 = vmatpush.msra.mxu0 %v732_v5  ;;  %1981 = vmatpush.msra.mxu2 %v732_v5  ;;  %v3036_v45 = vld [vmem:[#allocation13 + $0x10] sm:$0xff]  ;;  %v3040_v46 = vld [vmem:[#allocation13 + $0x8] sm:$0xff] }
  0x66   : > { %v2157_v9 = vld [vmem:[%s3370_s5] ss:$0 sm:$0xff]  ;;  %845 = vrot.lane.b32.xlu2 %v778_v8, %s2701_s7  ;;  %796 = vmatpush.msra.mxu1 %v2977_v6  ;;  %v3033_v44 = vld [vmem:[#allocation2 + $0x8] sm:$0xff]  ;;  %v3068_v55 = vld [vmem:[%s2945_s14 + $0x8] sm:$0xff] }
  0x67   : > { %824 = vrot.lane.b32.xlu0 %v2157_v9, %s2702_s25  ;;  %763 = vmatpush.msra.mxu0 %v731_v7  ;;  %v3026_v42 = vld [vmem:[#allocation15] sm:$0xff]  ;;  %v3046_v47 = vld [vmem:[%s2945_s14 + $0x18] sm:$0xff] }
  0x68   : > { %797 = vmatpush.msra.mxu1 %v2983_v10  ;;  %1931 = vmatmul.msk.f32.vlgmr.msra.gmra.mxu0 %vm735_vm1, %v2988_v11  ;;  %v2158_v40 = vld [vmem:[%s3371_s9] ss:$0 sm:$0xff] }
  0x69   : > { %1935 = vmatmul.msk.f32.vlgmr.msra.gmra.mxu1 %vm735_vm1, %v778_v8  ;;  %1982 = vmatpush.msra.mxu2 %v731_v7  ;;  %v3050_v48 = vld [vmem:[#allocation13] sm:$0xff] }
  0x6a   : > { %976 = vmatpush.msrb.mxu1 %v2972_v2  ;;  %898 = vmatpush.msra.mxu3 %v3015_v38  ;;  %v3097_v63 = vld [vmem:[%s3372_s26] ss:$0 sm:$0xff] }
  0x6b   : > { %1933 = vmatmul.msk.f32.vlgmr.msra.gmra.mxu2 %vm735_vm1, %v3024_v41 }
  0x6c   : > { %977 = vmatpush.msrb.mxu1 %v2975_v4  ;;  %899 = vmatpush.msra.mxu3 %v3017_v39 }
  0x6d   : > { %872 = vmatpush.msrb.mxu2 %v3030_v43 }
  0x6e   : > { %978 = vmatpush.msrb.mxu1 %v2977_v6  ;;  %900 = vmatpush.msra.mxu3 %v3026_v42 }
  0x6f   : > { %1938 = vmatmul.msk.f32.vlgmr.msra.gmra.mxu3 %vm735_vm1, %v3033_v44  ;;  %873 = vmatpush.msrb.mxu2 %v3036_v45 }
  0x70   : > { %979 = vmatpush.msrb.mxu1 %v2983_v10  ;;  %1070 = vmatpush.msrb.mxu3 %v3012_v37 }
  0x71   : > { %874 = vmatpush.msrb.mxu2 %v3040_v46  ;;  %1932 = vmatmul.msk.f32.gmra.mxu0 %vm735_vm1, %v3068_v55 }
  0x72   : > { %1145 = vmatpush.msra.mxu1 %v2972_v2  ;;  %1071 = vmatpush.msrb.mxu3 %v3015_v38 }
  0x73   : > { %1934 = vmatmul.msk.f32.gmra.mxu2 %vm735_vm1, %v3046_v47 }
  0x74   : > { %1146 = vmatpush.msra.mxu1 %v2975_v4  ;;  %875 = vmatpush.msrb.mxu2 %v3050_v48 }
  0x75   : > { %1072 = vmatpush.msrb.mxu3 %v3017_v39 }
  0x76   : > { %1147 = vmatpush.msra.mxu1 %v2977_v6  ;;  %1046 = vmatpush.msra.mxu2 %v3030_v43 }
  0x77   : > { %1073 = vmatpush.msrb.mxu3 %v3026_v42 }
  0x78   : > { %1148 = vmatpush.msra.mxu1 %v2983_v10  ;;  %1047 = vmatpush.msra.mxu2 %v3036_v45 }
  0x79   : > { %1239 = vmatpush.msra.mxu3 %v3012_v37 }
  0x7a   : > { %1048 = vmatpush.msra.mxu2 %v3040_v46 }
  0x7b   : > { %1240 = vmatpush.msra.mxu3 %v3015_v38 }
  0x7c   : > { %1049 = vmatpush.msra.mxu2 %v3050_v48 }
  0x7d   : > { %1241 = vmatpush.msra.mxu3 %v3017_v39 }
  0x7f   : > { %1242 = vmatpush.msra.mxu3 %v3026_v42 }
  0xc0   : > { %v846_v49 = vpop.permute.xlu2 %845 }
  0xd9   : > { %v3003_v12 = vpop.permute.xlu0 %824 }
  0xe5   : > { %v765_v16 = vpop.f32.mrf.mxu0 }
  0xe6   : > { %v799_v13 = vpop.f32.mrf.mxu1  ;;  %v777_v17 = vadd.f32 %v765_v16, %v3007_v15 }
  0xe7   : > { %v827_v14 = vadd.f32 %v3003_v12, %v799_v13 }
  0xe8   : > { %v802_v18 = vadd.f32 %v799_v13, %v777_v17 }
  0xe9   : > { %829 = vrot.lane.b32.xlu0 %v827_v14, %s2702_s25 }
  0xea   : > { %v1936_v19 = vmul.f32 -1.442695, %v802_v18 }
  0xec   : > { %2160 = vpow2.f32 %v1936_v19 }
  0xee   : > { %v3090_v61 = vpop.f32.mrf.mxu2 }
  0xf1   : > { %927 = vrot.lane.b32.xlu0 %v2158_v40, %s2702_s25 }
  0xf2   : > { %v2161_v20 = vpop.eup %2160  ;;  %v902_v59 = vpop.f32.mrf.mxu3 }
  0xf3   : > { %v806_v21 = vadd.f32 1.0, %v2161_v20 }
  0xf5   : > { %2162 = vrcp.f32 %v806_v21  ;;  %v818_v27 = vand.u32 2147483648, %v806_v21  ;;  %vm812_vm3 = vweird.f32 %v806_v21  ;;  %v816_v28 = vand.u32 2147483647, %v806_v21 }
  0xf6   : > { %v3092_v62 = vpop.f32.mrf.mxu2 }
  0xf7   : > { %v819_v30 = vor.u32 1.1754944e-38, %v818_v27  ;;  %vm817_vm5 = vcmp.eq.f32.partialorder %v816_v28, 8.507059e+37 }
  0xfb   : > { %v2163_v22 = vpop.eup %2162 }
  0xfc   : > { %v808_v23 = vmul.f32 %v2163_v22, %v806_v21  ;;  %vm813_vm2 = vweird.f32 %v2163_v22 }
  0xfd   : > { %vm814_vm4 = vmor %vm812_vm3, %vm813_vm2 }
  0xfe   : > { %v809_v24 = vsub.f32 1.0, %v808_v23  ;;  %v768_v23 = vpop.f32.mrf.mxu0 }
 0x100   : > { %v810_v25 = vmul.f32 %v2163_v22, %v809_v24  ;;  %v959_v24 = vadd.f32 %v768_v23, %v3007_v15 }
 0x102   : > { %v811_v26 = vadd.f32 %v2163_v22, %v810_v25 }
 0x104   : > { %v815_v29 = vsel %vm814_vm4, %v2163_v22, %v811_v26 }
 0x105   : > { %v820_v31 = vsel %vm817_vm5, %v819_v30, %v815_v29 }
 0x106   : > { %v839_v50 = vsub.f32 1.0, %v820_v31  ;;  %v848_v52 = vmul.f32 %v846_v49, %v820_v31 }
 0x15b   : > { %v830_v32 = vpop.permute.xlu0 %829 }
 0x15c   : > { %v832_v33 = vmul.f32 %v830_v32, %v820_v31 }
 0x15e   : > { %834 = vrot.lane.b32.xlu1 %v832_v33, %s2702_s25 }
 0x163   : > { %v3084_v58 = vpop.permute.xlu0 %927 }
 0x164   : > { %v930_v60 = vadd.f32 %v3084_v58, %v902_v59 }
 0x1d0   : > { %v835_v34 = vpop.permute.xlu1 %834 }
 0x1d1   : > { %v837_v35 = vadd.f32 %v835_v34, %v777_v17 }
 0x1d3   : > { %2164 = vtanh.f32 %v837_v35 }
 0x1d9   : > { %v2165_v36 = vpop.eup %2164 }
 0x1da   : > { %841 = vrot.lane.b32.xlu1 %v2165_v36, %s2703_s12 }
 0x1e2   : > { %932 = vrot.lane.b32.xlu1 %v930_v60, %s2702_s25 }
 0x24c   : > { %v842_v51 = vpop.permute.xlu1 %841 }
 0x24d   : > { %v844_v53 = vmul.f32 %v842_v51, %v839_v50 }
 0x24f   : > { %v849_v54 = vadd.f32 %v848_v52, %v844_v53 }
 0x251   : > { %851 = vrot.lane.b32.xlu2 %v849_v54, %s2703_s12 }
 0x254   : > { %v933_v19 = vpop.permute.xlu1 %932 }
 0x2ab   : > { %v852_v56 = vpop.permute.xlu2 %851 }
 0x2ac   : > { %854 = vst.msk [vmem:[#allocation2] sm:$0xff] %vm735_vm1, %v852_v56  ;;  %1937 = vmatmul.msk.f32.vlgmr.msrb.gmra.mxu2 %vm735_vm1, %v852_v56 }
 0x2ad   : > { %1215 = vmatpush.msrb.mxu2 %v3030_v43 }
 0x2af   : > { %1216 = vmatpush.msrb.mxu2 %v3036_v45 }
 0x2b1   : > { %1217 = vmatpush.msrb.mxu2 %v3040_v46 }
 0x2b3   : > { %v3077_v57 = vld [vmem:[#allocation2] sm:$0xff]  ;;  %1218 = vmatpush.msrb.mxu2 %v3050_v48 }
 0x2b4   : > { %1940 = vmatmul.msk.f32.vlgmr.msrb.gmra.mxu1 %vm735_vm1, %v3077_v57 }
 0x2b5   : > { %1314 = vmatpush.msrb.mxu1 %v2972_v2 }
 0x2b7   : > { %1315 = vmatpush.msrb.mxu1 %v2975_v4 }
 0x2b9   : > { %1316 = vmatpush.msrb.mxu1 %v2977_v6 }
 0x2bb   : > { %1317 = vmatpush.msrb.mxu1 %v2983_v10 }
 0x32f   : > { %v877_v0 = vpop.f32.mrf.mxu2 }
 0x330   : > { %v878_v1 = vadd.f32 %v3097_v63, %v877_v0 }
 0x331   : > { %v981_v2 = vpop.f32.mrf.mxu1 }
 0x332   : > { %v905_v3 = vadd.f32 %v902_v59, %v878_v1  ;;  %v1004_v4 = vadd.f32 %v981_v2, %v3003_v12  ;;  %v984_v25 = vadd.f32 %v981_v2, %v959_v24 }
 0x334   : > { %v1939_v5 = vmul.f32 -1.442695, %v905_v3  ;;  %1006 = vrot.lane.b32.xlu2 %v1004_v4, %s2702_s25  ;;  %v1941_v26 = vmul.f32 -1.442695, %v984_v25 }
 0x336   : > { %2166 = vpow2.f32 %v1939_v5 }
 0x33c   : > { %v2167_v6 = vpop.eup %2166 }
 0x33d   : > { %v909_v7 = vadd.f32 1.0, %v2167_v6 }
 0x33f   : > { %2168 = vrcp.f32 %v909_v7  ;;  %v921_v13 = vand.u32 2147483648, %v909_v7  ;;  %v919_v16 = vand.u32 2147483647, %v909_v7  ;;  %vm915_vm7 = vweird.f32 %v909_v7 }
 0x340   : > { %2170 = vpow2.f32 %v1941_v26 }
 0x341   : > { %v922_v18 = vor.u32 1.1754944e-38, %v921_v13  ;;  %vm920_vm9 = vcmp.eq.f32.partialorder %v919_v16, 8.507059e+37 }
 0x345   : > { %v2169_v8 = vpop.eup %2168 }
 0x346   : > { %v911_v9 = vmul.f32 %v2169_v8, %v909_v7  ;;  %vm916_vm6 = vweird.f32 %v2169_v8  ;;  %v2171_v27 = vpop.eup %2170 }
 0x347   : > { %vm917_vm8 = vmor %vm915_vm7, %vm916_vm6  ;;  %v988_v28 = vadd.f32 1.0, %v2171_v27 }
 0x348   : > { %v912_v10 = vsub.f32 1.0, %v911_v9 }
 0x349   : > { %2172 = vrcp.f32 %v988_v28  ;;  %v1000_v34 = vand.u32 2147483648, %v988_v28  ;;  %vm994_vm11 = vweird.f32 %v988_v28  ;;  %v998_v35 = vand.u32 2147483647, %v988_v28 }
 0x34a   : > { %v913_v14 = vmul.f32 %v2169_v8, %v912_v10 }
 0x34b   : > { %v1001_v40 = vor.u32 1.1754944e-38, %v1000_v34  ;;  %vm999_vm13 = vcmp.eq.f32.partialorder %v998_v35, 8.507059e+37 }
 0x34c   : > { %v914_v17 = vadd.f32 %v2169_v8, %v913_v14 }
 0x34e   : > { %v918_v20 = vsel %vm917_vm8, %v2169_v8, %v914_v17 }
 0x34f   : > { %v923_v21 = vsel %vm920_vm9, %v922_v18, %v918_v20  ;;  %v2173_v29 = vpop.eup %2172 }
 0x350   : > { %v935_v22 = vmul.f32 %v933_v19, %v923_v21  ;;  %v990_v30 = vmul.f32 %v2173_v29, %v988_v28  ;;  %vm995_vm10 = vweird.f32 %v2173_v29  ;;  %v942_v0 = vsub.f32 1.0, %v923_v21 }
 0x351   : > { %vm996_vm12 = vmor %vm994_vm11, %vm995_vm10 }
 0x352   : > { %937 = vrot.lane.b32.xlu0 %v935_v22, %s2702_s25  ;;  %v991_v31 = vsub.f32 1.0, %v990_v30 }
 0x354   : > { %v992_v32 = vmul.f32 %v2173_v29, %v991_v31  ;;  %v1128_v31 = vadd.f32 %v3090_v61, %v3007_v15 }
 0x356   : > { %v993_v33 = vadd.f32 %v2173_v29, %v992_v32 }
 0x358   : > { %v997_v36 = vsel %vm996_vm12, %v2173_v29, %v993_v33 }
 0x359   : > { %v1002_v49 = vsel %vm999_vm13, %v1001_v40, %v997_v36 }
 0x35a   : > { %948 = vrot.lane.b32.xlu0 %v3033_v44, %s2701_s7  ;;  %v1016_v6 = vsub.f32 1.0, %v1002_v49 }
 0x38e   : > { %v1007_v44 = vpop.permute.xlu2 %1006 }
 0x38f   : > { %v1009_v50 = vmul.f32 %v1007_v44, %v1002_v49 }
 0x391   : > { %1011 = vrot.lane.b32.xlu1 %v1009_v50, %s2702_s25 }
 0x3c4   : > { %v938_v51 = vpop.permute.xlu0 %937 }
 0x3c5   : > { %v940_v52 = vadd.f32 %v938_v51, %v878_v1 }
 0x3c7   : > { %2174 = vtanh.f32 %v940_v52 }
 0x3cc   : > { %v949_v60 = vpop.permute.xlu0 %948 }
 0x3cd   : > { %v2175_v53 = vpop.eup %2174  ;;  %v951_v3 = vmul.f32 %v949_v60, %v923_v21 }
 0x3ce   : > { %944 = vrot.lane.b32.xlu2 %v2175_v53, %s2703_s12 }
 0x3d6   : > { %1022 = vrot.lane.b32.xlu2 %v3077_v57, %s2701_s7 }
 0x403   : > { %v1012_v54 = vpop.permute.xlu1 %1011 }
 0x404   : > { %v1014_v56 = vadd.f32 %v1012_v54, %v959_v24 }
 0x406   : > { %2176 = vtanh.f32 %v1014_v56 }
 0x40c   : > { %v2177_v59 = vpop.eup %2176 }
 0x40d   : > { %1018 = vrot.lane.b32.xlu1 %v2177_v59, %s2703_s12 }
 0x428   : > { %v945_v2 = vpop.permute.xlu2 %944 }
 0x429   : > { %v947_v4 = vmul.f32 %v945_v2, %v942_v0 }
 0x42b   : > { %v952_v5 = vadd.f32 %v951_v3, %v947_v4 }
 0x42d   : > { %954 = vrot.lane.b32.xlu0 %v952_v5, %s2703_s12 }
 0x430   : > { %v1023_v1 = vpop.permute.xlu2 %1022 }
 0x431   : > { %v1025_v8 = vmul.f32 %v1023_v1, %v1002_v49 }
 0x47f   : > { %v1019_v7 = vpop.permute.xlu1 %1018 }
 0x480   : > { %v1021_v9 = vmul.f32 %v1019_v7, %v1016_v6 }
 0x482   : > { %v1026_v57 = vadd.f32 %v1025_v8, %v1021_v9 }
 0x484   : > { %1028 = vrot.lane.b32.xlu1 %v1026_v57, %s2703_s12 }
 0x49f   : > { %v955_v10 = vpop.permute.xlu0 %954 }
 0x4a0   : > { %957 = vst.msk [vmem:[#allocation2 + $0x8] sm:$0xff] %vm735_vm1, %v955_v10 }
 0x4a1   : > { %958 = vst.msk [vmem:[#allocation3] sm:$0xff] %vm735_vm1, %v955_v10 }
 0x4a7   : > { %v1054_v13 = vld [vmem:[#allocation2 + $0x8] sm:$0xff] }
 0x4a8   : > { %1943 = vmatmul.msk.f32.vlgmr.msrb.gmra.mxu3 %vm735_vm1, %v1054_v13 }
 0x4a9   : > { %1408 = vmatpush.msrb.mxu3 %v3012_v37 }
 0x4ab   : > { %1409 = vmatpush.msrb.mxu3 %v3015_v38 }
 0x4ad   : > { %1410 = vmatpush.msrb.mxu3 %v3017_v39 }
 0x4af   : > { %1411 = vmatpush.msrb.mxu3 %v3026_v42 }
 0x4f6   : > { %v1029_v14 = vpop.permute.xlu1 %1028 }
 0x4f7   : > { %1031 = vst.msk [vmem:[#allocation2] sm:$0xff] %vm735_vm1, %v1029_v14  ;;  %1942 = vmatmul.msk.f32.vlgmr.msra.gmra.mxu2 %vm735_vm1, %v1029_v14 }
 0x4f8   : > { %1384 = vmatpush.msra.mxu2 %v3030_v43 }
 0x4fa   : > { %1385 = vmatpush.msra.mxu2 %v3036_v45 }
 0x4fc   : > { %1386 = vmatpush.msra.mxu2 %v3040_v46 }
 0x4fe   : > { %v3125_v16 = vld [vmem:[#allocation2] sm:$0xff]  ;;  %1387 = vmatpush.msra.mxu2 %v3050_v48 }
 0x4ff   : > { %1945 = vmatmul.msk.f32.vlgmr.msra.gmra.mxu1 %vm735_vm1, %v3125_v16 }
 0x52b   : > { %v1075_v37 = vpop.f32.mrf.mxu3 }
 0x52c   : > { %v1098_v38 = vadd.f32 %v1075_v37, %v3084_v58 }
 0x52e   : > { %1100 = vrot.lane.b32.xlu2 %v1098_v38, %s2702_s25 }
 0x57a   : > { %v1051_v39 = vpop.f32.mrf.mxu2 }
 0x57b   : > { %v1052_v42 = vadd.f32 %v3097_v63, %v1051_v39  ;;  %v715_v39 = vld [vmem:[#allocation18 + $0x18] sm:$0xff] }
 0x57c   : > { %v1150_v43 = vpop.f32.mrf.mxu1  ;;  %1482 = vmatpush.msrb.mxu0 %v715_v39 }
 0x57d   : > { %v1078_v17 = vadd.f32 %v1075_v37, %v1052_v42  ;;  %v1173_v45 = vadd.f32 %v1150_v43, %v3003_v12  ;;  %v1153_v32 = vadd.f32 %v1150_v43, %v1128_v31  ;;  %v714_v43 = vld [vmem:[#allocation18 + $0x10] sm:$0xff] }
 0x57e   : > { %1483 = vmatpush.msrb.mxu0 %v714_v43 }
 0x57f   : > { %v1944_v46 = vmul.f32 -1.442695, %v1078_v17  ;;  %1175 = vrot.lane.b32.xlu0 %v1173_v45, %s2702_s25  ;;  %v1946_v33 = vmul.f32 -1.442695, %v1153_v32  ;;  %v710_v17 = vld [vmem:[#allocation16 + $0x10] sm:$0xff]  ;;  %v713_v45 = vld [vmem:[#allocation18 + $0x8] sm:$0xff] }
 0x580   : > { %1484 = vmatpush.msrb.mxu0 %v713_v45 }
 0x581   : > { %2178 = vpow2.f32 %v1944_v46  ;;  %v709_v46 = vld [vmem:[#allocation16 + $0x8] sm:$0xff] }
 0x587   : > { %v2179_v48 = vpop.eup %2178 }
 0x588   : > { %v1082_v18 = vadd.f32 1.0, %v2179_v48  ;;  %v1101_v28 = vpop.permute.xlu2 %1100  ;;  %v712_v48 = vld [vmem:[#allocation18] sm:$0xff] }
 0x589   : > { %1485 = vmatpush.msrb.mxu0 %v712_v48 }
 0x58a   : > { %2180 = vrcp.f32 %v1082_v18  ;;  %v1094_v22 = vand.u32 2147483648, %v1082_v18  ;;  %v1092_v24 = vand.u32 2147483647, %v1082_v18  ;;  %vm1088_vm15 = vweird.f32 %v1082_v18  ;;  %1955 = vmatmul.msk.f32.vlgmr.msrb.gmra.mxu0 %vm735_vm1, %v2988_v11 }
 0x58b   : > { %2182 = vpow2.f32 %v1946_v33 }
 0x58c   : > { %v1095_v26 = vor.u32 1.1754944e-38, %v1094_v22  ;;  %vm1093_vm2 = vcmp.eq.f32.partialorder %v1092_v24, 8.507059e+37 }
 0x590   : > { %v2181_v19 = vpop.eup %2180 }
 0x591   : > { %v1084_v20 = vmul.f32 %v2181_v19, %v1082_v18  ;;  %vm1089_vm14 = vweird.f32 %v2181_v19  ;;  %v2183_v34 = vpop.eup %2182  ;;  %v708_v18 = vld [vmem:[#allocation16] sm:$0xff] }
 0x592   : > { %vm1090_vm0 = vmor %vm1088_vm15, %vm1089_vm14  ;;  %v1157_v35 = vadd.f32 1.0, %v2183_v34  ;;  %1956 = vmatmul.msk.f32.gmra.mxu0 %vm735_vm1, %v3068_v55  ;;  %v1466_v55 = vld [vmem:[#allocation3] sm:$0xff] }
 0x593   : > { %v1085_v21 = vsub.f32 1.0, %v1084_v20 }
 0x594   : > { %2184 = vrcp.f32 %v1157_v35  ;;  %v1169_v51 = vand.u32 2147483648, %v1157_v35  ;;  %vm1163_vm4 = vweird.f32 %v1157_v35  ;;  %v1167_v52 = vand.u32 2147483647, %v1157_v35 }
 0x595   : > { %v1086_v23 = vmul.f32 %v2181_v19, %v1085_v21 }
 0x596   : > { %v1170_v54 = vor.u32 1.1754944e-38, %v1169_v51  ;;  %vm1168_vm6 = vcmp.eq.f32.partialorder %v1167_v52, 8.507059e+37 }
 0x597   : > { %v1087_v25 = vadd.f32 %v2181_v19, %v1086_v23 }
 0x599   : > { %v1091_v27 = vsel %vm1090_vm0, %v2181_v19, %v1087_v25 }
 0x59a   : > { %v1096_v29 = vsel %vm1093_vm2, %v1095_v26, %v1091_v27  ;;  %v2185_v36 = vpop.eup %2184  ;;  %1957 = vmatmul.msk.f32.gmra.mxu0 %vm735_vm1, %v3024_v41 }
 0x59b   : > { %v1103_v30 = vmul.f32 %v1101_v28, %v1096_v29  ;;  %v1159_v40 = vmul.f32 %v2185_v36, %v1157_v35  ;;  %vm1164_vm3 = vweird.f32 %v2185_v36  ;;  %v1110_v6 = vsub.f32 1.0, %v1096_v29 }
 0x59c   : > { %vm1165_vm5 = vmor %vm1163_vm4, %vm1164_vm3 }
 0x59d   : > { %1105 = vrot.lane.b32.xlu1 %v1103_v30, %s2702_s25  ;;  %v1160_v44 = vsub.f32 1.0, %v1159_v40  ;;  %v1297_v40 = vadd.f32 %v3092_v62, %v3007_v15 }
 0x59f   : > { %v1161_v49 = vmul.f32 %v2185_v36, %v1160_v44 }
 0x5a1   : > { %v1162_v50 = vadd.f32 %v2185_v36, %v1161_v49 }
 0x5a2   : > { %1958 = vmatmul.msk.f32.gmra.mxu0 %vm735_vm1, %v3046_v47  ;;  %v3172_v47 = vld [vmem:[#allocation9] sm:$0xff] }
 0x5a3   : > { %v1166_v53 = vsel %vm1165_vm5, %v2185_v36, %v1162_v50 }
 0x5a4   : > { %v1171_v56 = vsel %vm1168_vm6, %v1170_v54, %v1166_v53 }
 0x5a5   : > { %1116 = vrot.lane.b32.xlu1 %v1054_v13, %s2701_s7  ;;  %v1185_v13 = vsub.f32 1.0, %v1171_v56 }
 0x5f1   : > { %v1176_v61 = vpop.permute.xlu0 %1175 }
 0x5f2   : > { %v1178_v59 = vmul.f32 %v1176_v61, %v1171_v56 }
 0x5f4   : > { %1180 = vrot.lane.b32.xlu2 %v1178_v59, %s2702_s25 }
 0x607   : > { %v1487_v26 = vpop.f32.mrf.mxu0 }
 0x60f   : > { %v1106_v60 = vpop.permute.xlu1 %1105  ;;  %v1490_v30 = vpop.f32.mrf.mxu0 }
 0x610   : > { %v1108_v0 = vadd.f32 %v1106_v60, %v1052_v42  ;;  %v711_v42 = vld [vmem:[#allocation16 + $0x18] sm:$0xff] }
 0x611   : > { %1523 = vmatpush.msra.mxu1 %v711_v42 }
 0x612   : > { %2186 = vtanh.f32 %v1108_v0 }
 0x613   : > { %1524 = vmatpush.msra.mxu1 %v710_v17 }
 0x615   : > { %1525 = vmatpush.msra.mxu1 %v709_v46 }
 0x617   : > { %v1117_v1 = vpop.permute.xlu1 %1116  ;;  %1526 = vmatpush.msra.mxu1 %v708_v18 }
 0x618   : > { %v2187_v2 = vpop.eup %2186  ;;  %v1119_v8 = vmul.f32 %v1117_v1, %v1096_v29 }
 0x619   : > { %1112 = vrot.lane.b32.xlu0 %v2187_v2, %s2703_s12 }
 0x621   : > { %1191 = vrot.lane.b32.xlu0 %v3125_v16, %s2701_s7 }
 0x64e   : > { %v1181_v3 = vpop.permute.xlu2 %1180 }
 0x64f   : > { %v1183_v4 = vadd.f32 %v1181_v3, %v1128_v31 }
 0x651   : > { %2188 = vtanh.f32 %v1183_v4 }
 0x657   : > { %v2189_v5 = vpop.eup %2188 }
 0x658   : > { %1187 = vrot.lane.b32.xlu2 %v2189_v5, %s2703_s12 }
 0x68b   : > { %v1113_v7 = vpop.permute.xlu0 %1112 }
 0x68c   : > { %v1115_v9 = vmul.f32 %v1113_v7, %v1110_v6 }
 0x68e   : > { %v1120_v57 = vadd.f32 %v1119_v8, %v1115_v9 }
 0x690   : > { %1122 = vrot.lane.b32.xlu1 %v1120_v57, %s2703_s12 }
 0x693   : > { %v1192_v10 = vpop.permute.xlu0 %1191 }
 0x694   : > { %v1194_v37 = vmul.f32 %v1192_v10, %v1171_v56 }
 0x6b2   : > { %v1188_v14 = vpop.permute.xlu2 %1187 }
 0x6b3   : > { %v1190_v38 = vmul.f32 %v1188_v14, %v1185_v13 }
 0x6b5   : > { %v1195_v16 = vadd.f32 %v1194_v37, %v1190_v38 }
 0x6b7   : > { %1197 = vrot.lane.b32.xlu2 %v1195_v16, %s2703_s12 }
 0x702   : > { %v1123_v19 = vpop.permute.xlu1 %1122 }
 0x703   : > { %1125 = vst.msk [vmem:[#allocation2 + $0x8] sm:$0xff] %vm735_vm1, %v1123_v19 }
 0x704   : > { %1127 = vst.msk [vmem:[#allocation3 + $0x8] sm:$0xff] %vm735_vm1, %v1123_v19 }
 0x70a   : > { %v3150_v20 = vld [vmem:[#allocation2 + $0x8] sm:$0xff] }
 0x70b   : > { %1948 = vmatmul.msk.f32.vlgmr.msra.gmra.mxu3 %vm735_vm1, %v3150_v20  ;;  %v1467_v22 = vld [vmem:[#allocation3 + $0x8] sm:$0xff] }
 0x70c   : > { %1983 = vmatpush.msra.mxu3 %v711_v42 }
 0x70e   : > { %1984 = vmatpush.msra.mxu3 %v710_v17 }
 0x710   : > { %1985 = vmatpush.msra.mxu3 %v709_v46 }
 0x711   : > { %v1198_v21 = vpop.permute.xlu2 %1197 }
 0x712   : > { %1200 = vst.msk [vmem:[#allocation2] sm:$0xff] %vm735_vm1, %v1198_v21  ;;  %1947 = vmatmul.msk.f32.vlgmr.msrb.gmra.mxu2 %vm735_vm1, %v1198_v21  ;;  %1986 = vmatpush.msra.mxu3 %v708_v18 }
 0x719   : > { %v3160_v11 = vld [vmem:[#allocation2] sm:$0xff] }
 0x71a   : > { %1950 = vmatmul.msk.f32.vlgmr.msrb.gmra.mxu1 %vm735_vm1, %v3160_v11 }
 0x722   : > { %1959 = vmatmul.msk.f32.vlgmr.msra.gmra.mxu1 %vm735_vm1, %v1466_v55 }
 0x72a   : > { %1960 = vmatmul.msk.f32.gmra.mxu1 %vm735_vm1, %v1467_v22 }
 0x78e   : > { %v1244_v23 = vpop.f32.mrf.mxu3 }
 0x78f   : > { %v1267_v24 = vadd.f32 %v1244_v23, %v3084_v58 }
 0x791   : > { %1269 = vrot.lane.b32.xlu0 %v1267_v24, %s2702_s25 }
 0x797   : > { %v1319_v41 = vpop.f32.mrf.mxu1 }
 0x798   : > { %v1342_v25 = vadd.f32 %v1319_v41, %v3003_v12  ;;  %v1220_v12 = vpop.f32.mrf.mxu2  ;;  %v1322_v44 = vadd.f32 %v1319_v41, %v1297_v40 }
 0x799   : > { %v1221_v34 = vadd.f32 %v3097_v63, %v1220_v12  ;;  %v1493_v12 = vpop.f32.mrf.mxu0 }
 0x79a   : > { %1344 = vrot.lane.b32.xlu1 %v1342_v25, %s2702_s25  ;;  %v1951_v49 = vmul.f32 -1.442695, %v1322_v44 }
 0x79b   : > { %v1247_v35 = vadd.f32 %v1244_v23, %v1221_v34 }
 0x79d   : > { %v1949_v36 = vmul.f32 -1.442695, %v1247_v35 }
 0x79f   : > { %v1528_v27 = vpop.f32.mrf.mxu1  ;;  %2190 = vpow2.f32 %v1949_v36 }
 0x7a0   : > { %v1529_v28 = vadd.f32 %v1528_v27, %v1487_v26  ;;  %2192 = vpow2.f32 %v1951_v49 }
 0x7a2   : > { %v3175_v29 = vadd.f32 %v1529_v28, %v3172_v47 }
 0x7a4   : > { %1592 = vst [vmem:[%s2969_s6] sm:$0xff] %v3175_v29 }
 0x7a5   : > { %v2191_v50 = vpop.eup %2190 }
 0x7a6   : > { %v1251_v51 = vadd.f32 1.0, %v2191_v50  ;;  %v2193_v52 = vpop.eup %2192 }
 0x7a7   : > { %v1531_v31 = vpop.f32.mrf.mxu1  ;;  %v1326_v53 = vadd.f32 1.0, %v2193_v52 }
 0x7a8   : > { %v1532_v32 = vadd.f32 %v1531_v31, %v1490_v30  ;;  %2194 = vrcp.f32 %v1251_v51  ;;  %v1263_v3 = vand.u32 2147483648, %v1251_v51  ;;  %vm1257_vm8 = vweird.f32 %v1251_v51 }
 0x7a9   : > { %2196 = vrcp.f32 %v1326_v53  ;;  %v1261_v62 = vand.u32 2147483647, %v1251_v51  ;;  %v1338_v57 = vand.u32 2147483648, %v1326_v53  ;;  %vm1332_vm12 = vweird.f32 %v1326_v53 }
 0x7aa   : > { %v3180_v33 = vadd.f32 %v1532_v32, %v3172_v47  ;;  %v1264_v5 = vor.u32 1.1754944e-38, %v1263_v3  ;;  %v1336_v10 = vand.u32 2147483647, %v1326_v53 }
 0x7ab   : > { %vm1262_vm10 = vcmp.eq.f32.partialorder %v1261_v62, 8.507059e+37  ;;  %v1339_v14 = vor.u32 1.1754944e-38, %v1338_v57 }
 0x7ac   : > { %1593 = vst [vmem:[%s2969_s6 + $0x8] sm:$0xff] %v3180_v33  ;;  %vm1337_vm14 = vcmp.eq.f32.partialorder %v1336_v10, 8.507059e+37 }
 0x7ae   : > { %v2195_v54 = vpop.eup %2194 }
 0x7af   : > { %v1253_v61 = vmul.f32 %v2195_v54, %v1251_v51  ;;  %v2197_v59 = vpop.eup %2196  ;;  %vm1258_vm7 = vweird.f32 %v2195_v54 }
 0x7b0   : > { %v1328_v0 = vmul.f32 %v2197_v59, %v1326_v53  ;;  %vm1259_vm9 = vmor %vm1257_vm8, %vm1258_vm7  ;;  %vm1333_vm11 = vweird.f32 %v2197_v59 }
 0x7b1   : > { %v1254_v56 = vsub.f32 1.0, %v1253_v61  ;;  %vm1334_vm13 = vmor %vm1332_vm12, %vm1333_vm11 }
 0x7b2   : > { %v1329_v15 = vsub.f32 1.0, %v1328_v0 }
 0x7b3   : > { %v1255_v60 = vmul.f32 %v2195_v54, %v1254_v56 }
 0x7b4   : > { %v1330_v1 = vmul.f32 %v2197_v59, %v1329_v15 }
 0x7b5   : > { %v1256_v2 = vadd.f32 %v2195_v54, %v1255_v60 }
 0x7b6   : > { %v1331_v9 = vadd.f32 %v2197_v59, %v1330_v1 }
 0x7b7   : > { %v1260_v4 = vsel %vm1259_vm9, %v2195_v54, %v1256_v2 }
 0x7b8   : > { %v1265_v7 = vsel %vm1262_vm10, %v1264_v5, %v1260_v4  ;;  %v1335_v13 = vsel %vm1334_vm13, %v2197_v59, %v1331_v9 }
 0x7b9   : > { %v1340_v38 = vsel %vm1337_vm14, %v1339_v14, %v1335_v13  ;;  %v1279_v18 = vsub.f32 1.0, %v1265_v7 }
 0x7ba   : > { %v1354_v23 = vsub.f32 1.0, %v1340_v38 }
 0x803   : > { %v1270_v6 = vpop.permute.xlu0 %1269 }
 0x804   : > { %v1272_v8 = vmul.f32 %v1270_v6, %v1265_v7 }
 0x806   : > { %1274 = vrot.lane.b32.xlu2 %v1272_v8, %s2702_s25 }
 0x80c   : > { %v1345_v37 = vpop.permute.xlu1 %1344 }
 0x80d   : > { %v1347_v16 = vmul.f32 %v1345_v37, %v1340_v38 }
 0x80e   : > { %1285 = vrot.lane.b32.xlu2 %v3150_v20, %s2701_s7 }
 0x80f   : > { %1349 = vrot.lane.b32.xlu0 %v1347_v16, %s2702_s25 }
 0x860   : > { %v1275_v39 = vpop.permute.xlu2 %1274 }
 0x861   : > { %v1277_v42 = vadd.f32 %v1275_v39, %v1221_v34 }
 0x863   : > { %2198 = vtanh.f32 %v1277_v42 }
 0x868   : > { %v1286_v48 = vpop.permute.xlu2 %1285 }
 0x869   : > { %v2199_v43 = vpop.eup %2198  ;;  %v1288_v20 = vmul.f32 %v1286_v48, %v1265_v7 }
 0x86a   : > { %1281 = vrot.lane.b32.xlu1 %v2199_v43, %s2703_s12 }
 0x872   : > { %1360 = vrot.lane.b32.xlu1 %v3160_v11, %s2701_s7 }
 0x881   : > { %v1350_v17 = vpop.permute.xlu0 %1349 }
 0x882   : > { %v1352_v45 = vadd.f32 %v1350_v17, %v1297_v40 }
 0x884   : > { %2200 = vtanh.f32 %v1352_v45 }
 0x88a   : > { %v2201_v46 = vpop.eup %2200 }
 0x88b   : > { %1356 = vrot.lane.b32.xlu0 %v2201_v46, %s2703_s12 }
 0x8dc   : > { %v1282_v19 = vpop.permute.xlu1 %1281 }
 0x8dd   : > { %v1284_v21 = vmul.f32 %v1282_v19, %v1279_v18 }
 0x8df   : > { %v1289_v55 = vadd.f32 %v1288_v20, %v1284_v21 }
 0x8e1   : > { %1291 = vrot.lane.b32.xlu2 %v1289_v55, %s2703_s12 }
 0x8e4   : > { %v1361_v22 = vpop.permute.xlu1 %1360 }
 0x8e5   : > { %v1363_v41 = vmul.f32 %v1361_v22, %v1340_v38 }
 0x8fd   : > { %v1357_v24 = vpop.permute.xlu0 %1356 }
 0x8fe   : > { %v1359_v25 = vmul.f32 %v1357_v24, %v1354_v23 }
 0x900   : > { %v1364_v11 = vadd.f32 %v1363_v41, %v1359_v25  ;;  %v1496_v41 = vpop.f32.mrf.mxu0 }
 0x902   : > { %1366 = vrot.lane.b32.xlu0 %v1364_v11, %s2703_s12 }
 0x93b   : > { %v1292_v26 = vpop.permute.xlu2 %1291 }
 0x93c   : > { %1294 = vst.msk [vmem:[#allocation2 + $0x8] sm:$0xff] %vm735_vm1, %v1292_v26 }
 0x93d   : > { %1296 = vst.msk [vmem:[#allocation3 + $0x10] sm:$0xff] %vm735_vm1, %v1292_v26 }
 0x943   : > { %v1392_v27 = vld [vmem:[#allocation2 + $0x8] sm:$0xff] }
 0x944   : > { %1953 = vmatmul.msk.f32.vlgmr.msrb.gmra.mxu3 %vm735_vm1, %v1392_v27  ;;  %v1468_v28 = vld [vmem:[#allocation3 + $0x10] sm:$0xff] }
 0x94c   : > { %1961 = vmatmul.msk.f32.vlgmr.msra.gmra.mxu3 %vm735_vm1, %v1468_v28 }
 0x974   : > { %v1367_v30 = vpop.permute.xlu0 %1366 }
 0x975   : > { %1369 = vst.msk [vmem:[#allocation2] sm:$0xff] %vm735_vm1, %v1367_v30  ;;  %1952 = vmatmul.msk.f32.vlgmr.msra.gmra.mxu2 %vm735_vm1, %v1367_v30 }
 0x9c7   : > { %v1413_v31 = vpop.f32.mrf.mxu3 }
 0x9c8   : > { %v1436_v32 = vadd.f32 %v1413_v31, %v3084_v58 }
 0x9ca   : > { %1438 = vrot.lane.b32.xlu1 %v1436_v32, %s2702_s25 }
 0x9cf   : > { %v1534_v34 = vpop.f32.mrf.mxu3 }
 0x9d0   : > { %v1535_v35 = vadd.f32 %v1534_v34, %v1493_v12 }
 0x9d2   : > { %v3206_v36 = vadd.f32 %v1535_v35, %v3172_v47  ;;  %1454 = vrot.lane.b32.xlu1 %v1392_v27, %s2701_s7 }
 0x9d4   : > { %1594 = vst [vmem:[%s2969_s6 + $0x10] sm:$0xff] %v3206_v36 }
 0x9f8   : > { %v1389_v40 = vpop.f32.mrf.mxu2 }
 0x9f9   : > { %v1390_v44 = vadd.f32 %v3097_v63, %v1389_v40 }
 0x9fb   : > { %v1416_v49 = vadd.f32 %v1413_v31, %v1390_v44 }
 0x9fc   : > { %1546 = vmax.xlane.f32.xlu1 %v3180_v33 }
 0x9fd   : > { %v1954_v50 = vmul.f32 -1.442695, %v1416_v49 }
 0x9ff   : > { %2202 = vpow2.f32 %v1954_v50 }
 0xa05   : > { %v2203_v58 = vpop.eup %2202 }
 0xa06   : > { %v1420_v51 = vadd.f32 1.0, %v2203_v58 }
 0xa08   : > { %2204 = vrcp.f32 %v1420_v51  ;;  %v1432_v59 = vand.u32 2147483648, %v1420_v51  ;;  %vm1426_vm0 = vweird.f32 %v1420_v51  ;;  %v1430_v60 = vand.u32 2147483647, %v1420_v51 }
 0xa0a   : > { %v1433_v2 = vor.u32 1.1754944e-38, %v1432_v59  ;;  %vm1431_vm3 = vcmp.eq.f32.partialorder %v1430_v60, 8.507059e+37 }
 0xa0e   : > { %v2205_v52 = vpop.eup %2204 }
 0xa0f   : > { %v1422_v53 = vmul.f32 %v2205_v52, %v1420_v51  ;;  %vm1427_vm15 = vweird.f32 %v2205_v52 }
 0xa10   : > { %vm1428_vm2 = vmor %vm1426_vm0, %vm1427_vm15 }
 0xa11   : > { %v1423_v54 = vsub.f32 1.0, %v1422_v53 }
 0xa13   : > { %v1424_v61 = vmul.f32 %v2205_v52, %v1423_v54 }
 0xa15   : > { %v1425_v56 = vadd.f32 %v2205_v52, %v1424_v61 }
 0xa17   : > { %v1429_v0 = vsel %vm1428_vm2, %v2205_v52, %v1425_v56 }
 0xa18   : > { %v1434_v3 = vsel %vm1431_vm3, %v1433_v2, %v1429_v0 }
 0xa19   : > { %v1448_v16 = vsub.f32 1.0, %v1434_v3 }
 0xa3c   : > { %v1439_v63 = vpop.permute.xlu1 %1438 }
 0xa3d   : > { %v1441_v15 = vmul.f32 %v1439_v63, %v1434_v3 }
 0xa3f   : > { %1443 = vrot.lane.b32.xlu2 %v1441_v15, %s2702_s25 }
 0xa44   : > { %v1455_v62 = vpop.permute.xlu1 %1454 }
 0xa45   : > { %v1457_v4 = vmul.f32 %v1455_v62, %v1434_v3 }
 0xa6f   : > { %v1547_v5 = vpop.xlane.xlu1 %1546 }
 0xa70   : > { %v1553_v1 = vsub.f32 %v3180_v33, %v1547_v5 }
 0xa72   : > { %v1558_v6 = vmul.f32 1.442695, %v1553_v1 }
 0xa74   : > { %2206 = vpow2.f32 %v1558_v6 }
 0xa7a   : > { %v2207_v7 = vpop.eup %2206 }
 0xa7b   : > { %1566 = vadd.xlane.f32.xlu1 %v2207_v7 }
 0xa99   : > { %v1444_v8 = vpop.permute.xlu2 %1443 }
 0xa9a   : > { %v1446_v9 = vadd.f32 %v1444_v8, %v1390_v44 }
 0xa9c   : > { %2208 = vtanh.f32 %v1446_v9 }
 0xaa2   : > { %v2209_v57 = vpop.eup %2208 }
 0xaa3   : > { %1450 = vrot.lane.b32.xlu0 %v2209_v57, %s2703_s12 }
 0xacd   : > { %1544 = vmax.xlane.f32.xlu0 %v3175_v29 }
 0xaee   : > { %v1567_v10 = vpop.xlane.xlu1 %1566 }
 0xaef   : > { %2210 = vlog2.f32 %v1567_v10 }
 0xaf5   : > { %v2211_v13 = vpop.eup %2210 }
 0xaf6   : > { %v1575_v14 = vmul.f32 0.6931472, %v2211_v13 }
 0xaf8   : > { %v1581_v37 = vadd.f32 %v1575_v14, %v1547_v5 }
 0xafa   : > { %v1585_v38 = vsub.f32 %v3180_v33, %v1581_v37 }
 0xafc   : > { %1589 = vst [vmem:[%s2967_s4 + $0x8] sm:$0xff] %v1585_v38 }
 0xb15   : > { %v1451_v39 = vpop.permute.xlu0 %1450 }
 0xb16   : > { %v1453_v42 = vmul.f32 %v1451_v39, %v1448_v16 }
 0xb18   : > { %v1458_v43 = vadd.f32 %v1457_v4, %v1453_v42 }
 0xb1a   : > { %1460 = vrot.lane.b32.xlu2 %v1458_v43, %s2703_s12 }
 0xb40   : > { %v1545_v17 = vpop.xlane.xlu0 %1544 }
 0xb41   : > { %v1552_v45 = vsub.f32 %v3175_v29, %v1545_v17 }
 0xb43   : > { %v1556_v46 = vmul.f32 1.442695, %v1552_v45  ;;  %1548 = vmax.xlane.f32.xlu2 %v3206_v36 }
 0xb45   : > { %2212 = vpow2.f32 %v1556_v46 }
 0xb4b   : > { %v2213_v48 = vpop.eup %2212 }
 0xb4c   : > { %1564 = vadd.xlane.f32.xlu0 %v2213_v48 }
 0xb74   : > { %v1461_v18 = vpop.permute.xlu2 %1460 }
 0xb75   : > { %1463 = vst.msk [vmem:[#allocation2 + $0x8] sm:$0xff] %vm735_vm1, %v1461_v18 }
 0xb76   : > { %1465 = vst.msk [vmem:[#allocation3 + $0x18] sm:$0xff] %vm735_vm1, %v1461_v18 }
 0xb7d   : > { %v1469_v33 = vld [vmem:[#allocation3 + $0x18] sm:$0xff] }
 0xb7e   : > { %1962 = vmatmul.msk.f32.gmra.mxu3 %vm735_vm1, %v1469_v33 }
 0xbb6   : > { %v1549_v23 = vpop.xlane.xlu2 %1548 }
 0xbb7   : > { %v1554_v24 = vsub.f32 %v3206_v36, %v1549_v23 }
 0xbb9   : > { %v1560_v26 = vmul.f32 1.442695, %v1554_v24 }
 0xbbf   : > { %v1565_v19 = vpop.xlane.xlu0 %1564 }
 0xbc0   : > { %2214 = vlog2.f32 %v1565_v19 }
 0xbc1   : > { %2216 = vpow2.f32 %v1560_v26 }
 0xbc6   : > { %v2215_v20 = vpop.eup %2214 }
 0xbc7   : > { %v1573_v21 = vmul.f32 0.6931472, %v2215_v20  ;;  %v2217_v28 = vpop.eup %2216 }
 0xbc9   : > { %v1580_v55 = vadd.f32 %v1573_v21, %v1545_v17 }
 0xbcb   : > { %v1584_v22 = vsub.f32 %v3175_v29, %v1580_v55 }
 0xbcd   : > { %1588 = vst [vmem:[%s2967_s4] sm:$0xff] %v1584_v22 }
 0xc01   : > { %v1537_v25 = vpop.f32.mrf.mxu3 }
 0xc02   : > { %v1538_v11 = vadd.f32 %v1537_v25, %v1496_v41 }
 0xc04   : > { %v1543_v27 = vadd.f32 %v1538_v11, %v3172_v47 }
 0xc06   : > { %1595 = vst [vmem:[%s2969_s6 + $0x18] sm:$0xff] %v1543_v27  ;;  %1550 = vmax.xlane.f32.xlu2 %v1543_v27 }
 0xc0e   : > { %1568 = vadd.xlane.f32.xlu2 %v2217_v28 }
 0xc79   : > { %v1551_v30 = vpop.xlane.xlu2 %1550 }
 0xc7a   : > { %v1555_v31 = vsub.f32 %v1543_v27, %v1551_v30 }
 0xc7c   : > { %v1562_v32 = vmul.f32 1.442695, %v1555_v31 }
 0xc7e   : > { %2218 = vpow2.f32 %v1562_v32 }
 0xc81   : > { %v1569_v29 = vpop.xlane.xlu2 %1568 }
 0xc82   : > { %2220 = vlog2.f32 %v1569_v29 }
 0xc84   : > { %v2219_v12 = vpop.eup %2218 }
 0xc85   : > { %1570 = vadd.xlane.f32.xlu0 %v2219_v12 }
 0xc88   : > { %v2221_v34 = vpop.eup %2220 }
 0xc89   : > { %v1577_v35 = vmul.f32 0.6931472, %v2221_v34 }
 0xc8b   : > { %v1582_v40 = vadd.f32 %v1577_v35, %v1549_v23 }
 0xc8d   : > { %v1586_v47 = vsub.f32 %v3206_v36, %v1582_v40 }
 0xc8f   : > { %1590 = vst [vmem:[%s2967_s4 + $0x10] sm:$0xff] %v1586_v47 }
 0xcf8   : > { %v1571_v44 = vpop.xlane.xlu0 %1570 }
 0xcf9   : > { %2222 = vlog2.f32 %v1571_v44 }
 0xcff   : > { %v2223_v49 = vpop.eup %2222 }
 0xd00   : > { %v1579_v50 = vmul.f32 0.6931472, %v2223_v49 }
 0xd02   : > { %v1583_v58 = vadd.f32 %v1579_v50, %v1551_v30  ;;  %1599 = sbr.rel (%p1963_p1) target bundleno = 3339 (0xd0b), region = 112 }
 0xd04   : > { %v1587_v51 = vsub.f32 %v1543_v27, %v1583_v58 }
 0xd06   : > { %1591 = vst [vmem:[%s2967_s4 + $0x18] sm:$0xff] %v1587_v51 }
 0xd07   : > { %v1600_v52 = vld [vmem:[#allocation2] sm:$0xff]  ;;  %v1601_v53 = vld [vmem:[#allocation2 + $0x8] sm:$0xff] }
 0xd08   : > { %1602 = vst.msk [vmem:[#allocation22] sm:$0xff] %vm735_vm1, %v1600_v52 }
 0xd09   : > { %1603 = vst.msk [vmem:[#allocation22 + $0x8] sm:$0xff] %vm735_vm1, %v1601_v53 }
 0xd0a   : > { %1605 = vst.msk [vmem:[#allocation23] sm:$0xff] %vm735_vm1, %v1601_v53 }
 0xd0b PF: > { %s1611_s2 = sand.u32 1, %s2819_s24   ;;  %s1977_s14 = sshll.u32 %s2680_s21, 5 }
 0xd0c   : > { %s3373_s7 = sld [smem:[#allocation45_spill]]  ;;  %s1643_s12 = sshll.u32 %s2969_s6, 4  ;;  %s1644_s12 = int_to_ptr.vmem [resolvable:$true] %s1643_s12 }
 0xd0d   : > { %s1612_s3 = scalar_lea.sflag [#allocation21], %s1611_s2 }
 0xd12   : > { %s1642_s25 = scalar_lea.hbm %s3373_s7, %s1977_s14  ;;  %s2514_s21 = scalar_lea.hbm %s3373_s7, 64 }
 0xd13   : > { %s1645_s27 = sshll.u32 %s1642_s25, 4  ;;  %s1646_s27 = int_to_ptr.hbm [resolvable:$true] %s1645_s27 }
 0xd14   : > { %s2508_s16 = sshra.s32 %s1646_s27, 4  ;;  %s2509_s16 = int_to_ptr.hbm [resolvable:$true] %s2508_s16 }
 0xd15   : > { %s2510_s1 = scalar_lea.hbm %s2509_s16, 32  ;;  %p2515_p13 = scmp.lt.s32.totalorder %s2509_s16, %s3373_s7 }
 0xd16   : > { %p2511_p8 = scmp.ne.s32.totalorder %s2509_s16, %s2510_s1  ;;  %p2516_p2 = scmp.lt.s32.totalorder %s2514_s21, %s2510_s1 }
 0xd18   : > { %p2512_p9 = pnand %p2511_p8, %p2916_p0  ;;  %p2517_p5 = por %p2516_p2, %p2515_p13 }
 0xd1a   : > { %p2513_p10 = pneg %p2512_p9 }
 0xd1c   : > { %p2518_p7 = pnand %p2517_p5, %p2513_p10 }
 0xd1e   : > { %2521 = shalt.err (!%p2518_p7)
}
 0xd1f   : > { %s2704_s6 = smov 128   ;;  %s2705_s2 = smov 8  }
 0xd20   : > { %2022 = dma.vmem_to_hbm [thread:$0]  (%p2916_p0), %s1644_s12, 512, %s1646_s27, %s1612_s3, %s2704_s6, %s2704_s6, %s2705_s2  }
 0xd21   : > { %s3374_s29 = sld [smem:[#allocation44_spill]]  ;;  %s1625_s9 = sshll.u32 %s2967_s4, 4  ;;  %s1626_s9 = int_to_ptr.vmem [resolvable:$true] %s1625_s9 }
 0xd22   : > { %s1607_s16 = scalar_lea.sflag [#allocation6], %s2941_s8 }
 0xd27   : > { %s1624_s5 = scalar_lea.hbm %s3374_s29, %s1977_s14  ;;  %s2542_s12 = scalar_lea.hbm %s3374_s29, 64 }
 0xd28   : > { %s1627_s25 = sshll.u32 %s1624_s5, 4  ;;  %s1628_s25 = int_to_ptr.hbm [resolvable:$true] %s1627_s25 }
 0xd29   : > { %s2536_s1 = sshra.s32 %s1628_s25, 4  ;;  %s2537_s1 = int_to_ptr.hbm [resolvable:$true] %s2536_s1 }
 0xd2a   : > { %s2538_s26 = scalar_lea.hbm %s2537_s1, 32  ;;  %p2543_p8 = scmp.lt.s32.totalorder %s2537_s1, %s3374_s29 }
 0xd2b   : > { %p2539_p12 = scmp.ne.s32.totalorder %s2537_s1, %s2538_s26  ;;  %p2544_p9 = scmp.lt.s32.totalorder %s2542_s12, %s2538_s26 }
 0xd2d   : > { %p2540_p3 = pnand %p2539_p12, %p2916_p0  ;;  %p2545_p10 = por %p2544_p9, %p2543_p8 }
 0xd2f   : > { %p2541_p1 = pneg %p2540_p3 }
 0xd31   : > { %p2546_p13 = pnand %p2545_p10, %p2541_p1 }
 0xd33   : > { %2549 = shalt.err (!%p2546_p13)
}
 0xd34   : > { %2021 = dma.vmem_to_hbm [thread:$0]  (%p2916_p0), %s1626_s9, 512, %s1628_s25, %s1607_s16, %s2704_s6, %s2704_s6, %s2705_s2  }
 0xd35   : > { %s2706_s8 = smov [#allocation22]   ;;  %s3375_s0 = sld [smem:[#allocation46_spill]] }
 0xd36   : > { %s1659_s4 = sshll.u32 %s2706_s8, 4  ;;  %s3376_s1 = sld [smem:[#allocation47_spill]]  ;;  %s1660_s4 = int_to_ptr.vmem [resolvable:$true] %s1659_s4 }
 0xd37   : > { %s2707_s21 = smov [#allocation23]  }
 0xd38   : > { %s1676_s12 = sshll.u32 %s2707_s21, 4  ;;  %s1677_s12 = int_to_ptr.vmem [resolvable:$true] %s1676_s12 }
 0xd3b   : > { %s1661_s28 = sshll.u32 %s3375_s0, 4  ;;  %s1662_s28 = int_to_ptr.hbm [resolvable:$true] %s1661_s28 }
 0xd3c   : > { %2024 = dma.vmem_to_hbm [thread:$0]  (%p341_p11), %s1660_s4, 256, %s1662_s28, [#allocation21], %s2704_s6, %s2704_s6, %s2705_s2  }
 0xd3d   : > { %s1678_s26 = sshll.u32 %s3376_s1, 4  ;;  %s1679_s26 = int_to_ptr.hbm [resolvable:$true] %s1678_s26 }
 0xd3e   : > { %2026 = dma.vmem_to_hbm [thread:$0]  (%p341_p11), %s1677_s12, 128, %s1679_s26, [#allocation24]  }
 0xd3f   : > { %2651 = dma.done.wait (%p341_p11), [#allocation21], 256  }
 0xd40   : > { %2653 = vsyncadd (%p341_p11), [#allocation21], 4294967040 }
 0xd41   : > { %2655 = dma.done.wait (%p341_p11), [#allocation24], 128  }
 0xd42   : > { %2657 = vsyncadd (%p341_p11), [#allocation24], 4294967168 }
 0xd43 PF: > { %s1700_s6 = sand.u32 1, %s2668_s18   ;;  %p2063_p0 = pnand %p1914_p4, %p2925_p6 }
 0xd44   : > { %s1701_s2 = scalar_lea.sflag [#allocation6], %s1700_s6 }
 0xd45   : > { %p2064_p2 = pneg %p2063_p0 }
 0xd47   : > { %2659 = dma.done.wait (%p2064_p2), %s1701_s2, 512  }
 0xd48   : > { %2661 = vsyncadd (%p2064_p2), %s1701_s2, 4294966784  ;;  %s3377_s9 = sadd.s32 4294967294, %s2688_s23  }
 0xd49   : > { %s1710_s25 = sand.u32 1, %s3377_s9  }
 0xd4a   : > { %s1711_s16 = scalar_lea.sflag [#allocation21], %s1710_s25 }
 0xd4b   : > { %2663 = dma.done.wait (%p2064_p2), %s1711_s16, 512  }
 0xd4c   : > { %2665 = vsyncadd (%p2064_p2), %s1711_s16, 4294966784  ;;  %s40_s23 = sadd.s32 1, %s2688_s23   ;;  %s3378_s18 = smov %s2672_s19 }
 0xd4d   : > { %p37_p11 = scmp.ge.s32.totalorder %s40_s23, 4   ;;  %s3379_s19 = smov %s2676_s20 }
 0xd4e   : > { %s3380_s20 = smov %s2923_s15  ;;  %s3381_s21 = smov %s2684_s22 }
 0xd4f   : > { %s3382_s22 = smov %s3384_s13  ;;  %39 = sbr.rel (!%p37_p11) target bundleno = 28 (0x1c), region = 194 }
 0xd54   :  { %1717 = vsyncpa [#allocation5], 1 }
 0xd55   :  { %1719 = vsyncpa [#allocation5 + $0x1], 1 }
 0xd56   :  { %1720 = vsyncpa [#allocation8], 1 }
 0xd57   :  { %1721 = vsyncpa [#allocation11], 1 }
 0xd58   :  { %1722 = vsyncpa [#allocation14], 1 }
 0xd59   :  { %1723 = vsyncpa [#allocation17], 1 }
 0xd5a   :  { %1724 = vsyncpa [#allocation6], 1 }
 0xd5b   :  { %1726 = vsyncpa [#allocation6 + $0x1], 1 }
 0xd5c   :  { %1727 = vsyncpa [#allocation21], 1 }
 0xd5d   :  { %1729 = vsyncpa [#allocation21 + $0x1], 1 }
 0xd5e   :  { %1730 = vsyncpa [#allocation24], 1 }

</bundles_post_ra>
